<compile_context>
chip_gen: v6e
topology: v6e:2x2x1
jax: 0.10.0
libtpu: 0.0.40
codegen_flags: <defaults>
</compile_context>

<pallas_src>
import functools
import math

import jax
import jax.numpy as jnp
import numpy as np
from jax.experimental import pallas as pl
from jax.experimental.pallas import tpu as pltpu


ALPHA = 0.075      # CELU alpha used by BasicBlock
EPS = 1e-3         # FusedConvBN eps
_DEEP_K_MAX_C = 32  # deep-K im2col slab only for tiny C; per-tap matmuls otherwise


def _celu(x, alpha):
    # torch.nn.CELU, overflow-safe form (exp only ever sees x <= 0).
    return jnp.where(x > 0, x, alpha * (jnp.exp(jnp.minimum(x, 0.0) / alpha) - 1.0))


def _basic_block_kernel(x_ref, w1_ref, w2_ref, mask_ref, o_ref, *scratch,
                        W, eps, alpha, compute_dtype, use_deep_k):
    """Whole BasicBlock forward, one invocation (grid=(1,)).

    Layouts (lane axis = flattened batch*spatial):
      x_ref:    (C, B*H*W)   f32 activations, channel-major
      w*_ref:   (C, 9*C)     conv weights, 3x3 taps merged into K (tap-major, then Cin)
      mask_ref: (9, B*H*W)   f32 per-tap mask: zeros every out-of-image, cross-image
                             and circular-wrap source pixel
      o_ref:    (C, B*H*W)   output (f32)
      scratch:  optionally one (9*C, B*H*W) VMEM im2col slab (deep-K path only)
    """
    C, NL = x_ref.shape            # NL = B*H*W  (== BN reduction count per channel)

    def taps_of(a_f32):
        """Yield the 9 shifted+masked conv taps of `a_f32`, each (C, NL) f32."""
        for t in range(9):
            dy, dx = t // 3 - 1, t % 3 - 1
            shift = dy * W + dx
            if shift == 0:
                yield t, a_f32                                   # center tap, mask all-ones
            else:
                rolled = pltpu.roll(a_f32, shift=(-shift) % NL, axis=1)   # XLU, lanes
                yield t, rolled * mask_ref[t:t + 1, :]

    def conv3x3_bn(a_f32, w_ref):
        """3x3 conv (stride 1, pad 1) + FusedConvBN normalisation -> (C, NL) f32."""
        if use_deep_k:
            # Tiny C: one deep matmul (C, 9C) x (9C, NL) keeps the MXU pipeline full.
            patch_ref = scratch[0]
            for t, tap in taps_of(a_f32):
                patch_ref[t * C:(t + 1) * C, :] = tap.astype(compute_dtype)
            acc = jnp.dot(w_ref[...], patch_ref[...],
                          preferred_element_type=jnp.float32)
        else:
            # Realistic C: never materialise the 9x-activation slab; accumulate
            # 9 per-tap matmuls (K = C is already deep enough for the MXU).
            w = w_ref[...]
            acc = jnp.zeros((C, NL), jnp.float32)
            for t, tap in taps_of(a_f32):
                acc = acc + jnp.dot(w[:, t * C:(t + 1) * C],
                                    tap.astype(compute_dtype),
                                    preferred_element_type=jnp.float32)

        # Two-pass BN statistics (unbiased variance, eps added OUTSIDE sqrt).
        mean = jnp.sum(acc, axis=1, keepdims=True) * (1.0 / NL)          # (C, 1)
        centered = acc - mean
        var = jnp.sum(centered * centered, axis=1, keepdims=True) * (1.0 / (NL - 1))
        inv = 1.0 / (jnp.sqrt(var) + eps)                                # tiny, exact
        return centered * inv

    x = x_ref[...].astype(jnp.float32)                   # read once: conv1 + shortcut
    y = _celu(conv3x3_bn(x, w1_ref), alpha)              # stage 1 (+CELU)
    z = conv3x3_bn(y, w2_ref)                            # stage 2
    o_ref[...] = _celu(z + x, alpha).astype(o_ref.dtype)  # identity shortcut + CELU


def _tap_masks(B, H, W):
    """(9, B*H*W) f32: 1 where the (dy, dx) tap's source pixel is inside its image."""
    h = np.arange(H)[:, None]
    w = np.arange(W)[None, :]
    ms = []
    for dy in (-1, 0, 1):
        for dx in (-1, 0, 1):
            valid = (h + dy >= 0) & (h + dy < H) & (w + dx >= 0) & (w + dx < W)
            ms.append(valid.reshape(H * W))
    m = np.stack(ms, 0).astype(np.float32)          # (9, H*W)
    return jnp.asarray(np.tile(m, (1, B)))          # (9, B*H*W)


def basic_block_forward(x_nchw, w1_oihw, w2_oihw, *, eps=EPS, alpha=ALPHA,
                        compute_dtype=jnp.float32):
    """BasicBlock forward (stride=1, identity shortcut). PyTorch NCHW in/out."""
    B, C, H, W = x_nchw.shape
    assert w1_oihw.shape == (C, C, 3, 3) and w2_oihw.shape == (C, C, 3, 3)
    NL = B * H * W
    use_deep_k = C < _DEEP_K_MAX_C

    # (B,C,H,W) -> (C, B*H*W): channel-major, lane axis is batch*spatial (lane-dense).
    x_flat = jnp.transpose(x_nchw, (1, 0, 2, 3)).reshape(C, NL).astype(jnp.float32)
    # (O,I,kh,kw) -> (O,kh,kw,I) -> (O, 9*I): taps merged into the contraction dim.
    w1f = jnp.transpose(w1_oihw, (0, 2, 3, 1)).reshape(C, 9 * C).astype(compute_dtype)
    w2f = jnp.transpose(w2_oihw, (0, 2, 3, 1)).reshape(C, 9 * C).astype(compute_dtype)
    masks = _tap_masks(B, H, W)

    kernel = functools.partial(
        _basic_block_kernel, W=W, eps=eps, alpha=alpha,
        compute_dtype=compute_dtype, use_deep_k=use_deep_k)

    itemsize = jnp.dtype(compute_dtype).itemsize
    scratch_shapes = [pltpu.VMEM((9 * C, NL), compute_dtype)] if use_deep_k else []
    # Rough resident set: x/y/z/acc/out in f32 + slab (+weights), with headroom.
    est = 6 * C * NL * 4 + (9 * C * NL * itemsize if use_deep_k else 0) + 2 * C * 9 * C * itemsize
    vmem_limit = int(max(32 * 1024 * 1024, min(2 * est, 100 * 1024 * 1024)))

    out_flat = pl.pallas_call(
        kernel,
        grid=(1,),
        in_specs=[
            pl.BlockSpec((C, NL), lambda i: (0, 0)),
            pl.BlockSpec((C, 9 * C), lambda i: (0, 0)),
            pl.BlockSpec((C, 9 * C), lambda i: (0, 0)),
            pl.BlockSpec((9, NL), lambda i: (0, 0)),
        ],
        out_specs=pl.BlockSpec((C, NL), lambda i: (0, 0)),
        out_shape=jax.ShapeDtypeStruct((C, NL), jnp.float32),
        scratch_shapes=scratch_shapes,
        compiler_params=pltpu.CompilerParams(
            dimension_semantics=("arbitrary",),
            vmem_limit_bytes=vmem_limit),
    )(x_flat, w1f, w2f, masks)

    out = jnp.transpose(out_flat.reshape(C, B, H, W), (1, 0, 2, 3))
    return out.astype(x_nchw.dtype)


# ------------------------- pure-JAX reference -------------------------------
def _ref_fused_conv_bn(x_nchw, w_oihw, eps):
    y = jax.lax.conv_general_dilated(
        x_nchw, w_oihw, window_strides=(1, 1), padding=((1, 1), (1, 1)),
        dimension_numbers=("NCHW", "OIHW", "NCHW"),
        precision=jax.lax.Precision.HIGHEST)
    N = y.shape[0] * y.shape[2] * y.shape[3]
    mean = jnp.mean(y, axis=(0, 2, 3))
    var = jnp.sum((y - mean[None, :, None, None]) ** 2, axis=(0, 2, 3)) / (N - 1)
    return (y - mean[None, :, None, None]) / (jnp.sqrt(var)[None, :, None, None] + eps)


def _ref_basic_block(x, w1, w2, eps=EPS, alpha=ALPHA):
    y = _celu(_ref_fused_conv_bn(x, w1, eps), alpha)
    z = _ref_fused_conv_bn(y, w2, eps)
    return _celu(z + x, alpha)


if __name__ == "__main__":
    B, C, H, W = 2, 4, 16, 16          # in_channels == out_channels, stride=1
    key = jax.random.PRNGKey(0)
    kx, k1, k2 = jax.random.split(key, 3)

    x = jax.random.normal(kx, (B, C, H, W), dtype=jnp.float32)

    # FusedConvBN.reset_parameters: uniform(-stdv, stdv), stdv = 1/sqrt(Cin*k*k)
    stdv = 1.0 / math.sqrt(C * 3 * 3)
    w1 = jax.random.uniform(k1, (C, C, 3, 3), jnp.float32, -stdv, stdv)
    w2 = jax.random.uniform(k2, (C, C, 3, 3), jnp.float32, -stdv, stdv)

    ref = jax.block_until_ready(_ref_basic_block(x, w1, w2))

    # f32 MXU path: tight tolerance against the f32 HIGHEST-precision reference.
    out_f32 = jax.block_until_ready(basic_block_forward(x, w1, w2))
    assert out_f32.shape == (B, C, H, W)
    np.testing.assert_allclose(np.asarray(out_f32), np.asarray(ref), rtol=5e-3, atol=5e-3)

    # bf16 MXU operands (v6e/v7x fast path), f32 accumulation: looser tolerance.
    out_bf16 = jax.block_until_ready(
        basic_block_forward(x, w1, w2, compute_dtype=jnp.bfloat16))
    np.testing.assert_allclose(np.asarray(out_bf16), np.asarray(ref), rtol=5e-2, atol=5e-2)

    print("KERNEL_OK")
</pallas_src>

<mosaic_0001>
module attributes {stable_mosaic.version = 11 : i64} {
  func.func @_basic_block_kernel(%arg0: i32, %arg1: memref<4x512xf32, #tpu.memory_space<vmem>>, %arg2: memref<4x36xf32, #tpu.memory_space<vmem>>, %arg3: memref<4x36xf32, #tpu.memory_space<vmem>>, %arg4: memref<9x512xf32, #tpu.memory_space<vmem>>, %arg5: memref<4x512xf32, #tpu.memory_space<vmem>>, %arg6: memref<36x512xf32, #tpu.memory_space<vmem>>) attributes {dimension_semantics = [#tpu.dimension_semantics<arbitrary>], iteration_bounds = array<i64: 1>, scalar_prefetch = 0 : i64, scratch_operands = 1 : i64, tpu.core_type = #tpu.core_type<tc>, window_params = [{pipeline_mode = #tpu.pipeline_mode<synchronous>, transform_indices = @transform_0, window_bounds = array<i64: 4, 512>}, {pipeline_mode = #tpu.pipeline_mode<synchronous>, transform_indices = @transform_1, window_bounds = array<i64: 4, 36>}, {pipeline_mode = #tpu.pipeline_mode<synchronous>, transform_indices = @transform_2, window_bounds = array<i64: 4, 36>}, {pipeline_mode = #tpu.pipeline_mode<synchronous>, transform_indices = @transform_3, window_bounds = array<i64: 9, 512>}, {pipeline_mode = #tpu.pipeline_mode<synchronous>, transform_indices = @transform_4, window_bounds = array<i64: 4, 512>}]} {
    %c0 = arith.constant 0 : index
    %c0_0 = arith.constant 0 : index
    %0 = vector.load %arg1[%c0, %c0_0] : memref<4x512xf32, #tpu.memory_space<vmem>>, vector<4x512xf32>
    %c17_i32 = arith.constant 17 : i32
    %1 = tpu.dynamic_rotate %0 by %c17_i32 dim 1 : vector<4x512xf32>, i32 -> vector<4x512xf32>
    %c0_1 = arith.constant 0 : index
    %c0_2 = arith.constant 0 : index
    %2 = vector.load %arg4[%c0_1, %c0_2] : memref<9x512xf32, #tpu.memory_space<vmem>>, vector<1x512xf32>
    %3 = vector.broadcast %2 : vector<1x512xf32> to vector<4x512xf32>
    %4 = arith.mulf %1, %3 : vector<4x512xf32>
    %c0_3 = arith.constant 0 : index
    %c0_4 = arith.constant 0 : index
    %5 = vector.load %arg6[%c0_3, %c0_4] : memref<36x512xf32, #tpu.memory_space<vmem>>, vector<4x512xf32>
    tpu.vector_store %arg6[%c0_3, %c0_4], %4 {strides = array<i32>} : memref<36x512xf32, #tpu.memory_space<vmem>>, vector<4x512xf32>,
    %c16_i32 = arith.constant 16 : i32
    %6 = tpu.dynamic_rotate %0 by %c16_i32 dim 1 : vector<4x512xf32>, i32 -> vector<4x512xf32>
    %c1 = arith.constant 1 : index
    %c0_5 = arith.constant 0 : index
    %7 = vector.load %arg4[%c1, %c0_5] : memref<9x512xf32, #tpu.memory_space<vmem>>, vector<1x512xf32>
    %8 = vector.broadcast %7 : vector<1x512xf32> to vector<4x512xf32>
    %9 = arith.mulf %6, %8 : vector<4x512xf32>
    %c4 = arith.constant 4 : index
    %c0_6 = arith.constant 0 : index
    %10 = vector.load %arg6[%c4, %c0_6] : memref<36x512xf32, #tpu.memory_space<vmem>>, vector<4x512xf32>
    tpu.vector_store %arg6[%c4, %c0_6], %9 {strides = array<i32>} : memref<36x512xf32, #tpu.memory_space<vmem>>, vector<4x512xf32>,
    %c15_i32 = arith.constant 15 : i32
    %11 = tpu.dynamic_rotate %0 by %c15_i32 dim 1 : vector<4x512xf32>, i32 -> vector<4x512xf32>
    %c2 = arith.constant 2 : index
    %c0_7 = arith.constant 0 : index
    %12 = vector.load %arg4[%c2, %c0_7] : memref<9x512xf32, #tpu.memory_space<vmem>>, vector<1x512xf32>
    %13 = vector.broadcast %12 : vector<1x512xf32> to vector<4x512xf32>
    %14 = arith.mulf %11, %13 : vector<4x512xf32>
    %c8 = arith.constant 8 : index
    %c0_8 = arith.constant 0 : index
    %15 = vector.load %arg6[%c8, %c0_8] : memref<36x512xf32, #tpu.memory_space<vmem>>, vector<4x512xf32>
    tpu.vector_store %arg6[%c8, %c0_8], %14 {strides = array<i32>} : memref<36x512xf32, #tpu.memory_space<vmem>>, vector<4x512xf32>,
    %c1_i32 = arith.constant 1 : i32
    %16 = tpu.dynamic_rotate %0 by %c1_i32 dim 1 : vector<4x512xf32>, i32 -> vector<4x512xf32>
    %c3 = arith.constant 3 : index
    %c0_9 = arith.constant 0 : index
    %17 = vector.load %arg4[%c3, %c0_9] : memref<9x512xf32, #tpu.memory_space<vmem>>, vector<1x512xf32>
    %18 = vector.broadcast %17 : vector<1x512xf32> to vector<4x512xf32>
    %19 = arith.mulf %16, %18 : vector<4x512xf32>
    %c12 = arith.constant 12 : index
    %c0_10 = arith.constant 0 : index
    %20 = vector.load %arg6[%c12, %c0_10] : memref<36x512xf32, #tpu.memory_space<vmem>>, vector<4x512xf32>
    tpu.vector_store %arg6[%c12, %c0_10], %19 {strides = array<i32>} : memref<36x512xf32, #tpu.memory_space<vmem>>, vector<4x512xf32>,
    %c16 = arith.constant 16 : index
    %c0_11 = arith.constant 0 : index
    %21 = vector.load %arg6[%c16, %c0_11] : memref<36x512xf32, #tpu.memory_space<vmem>>, vector<4x512xf32>
    tpu.vector_store %arg6[%c16, %c0_11], %0 {strides = array<i32>} : memref<36x512xf32, #tpu.memory_space<vmem>>, vector<4x512xf32>,
    %c511_i32 = arith.constant 511 : i32
    %22 = tpu.dynamic_rotate %0 by %c511_i32 dim 1 : vector<4x512xf32>, i32 -> vector<4x512xf32>
    %c5 = arith.constant 5 : index
    %c0_12 = arith.constant 0 : index
    %23 = vector.load %arg4[%c5, %c0_12] : memref<9x512xf32, #tpu.memory_space<vmem>>, vector<1x512xf32>
    %24 = vector.broadcast %23 : vector<1x512xf32> to vector<4x512xf32>
    %25 = arith.mulf %22, %24 : vector<4x512xf32>
    %c20 = arith.constant 20 : index
    %c0_13 = arith.constant 0 : index
    %26 = vector.load %arg6[%c20, %c0_13] : memref<36x512xf32, #tpu.memory_space<vmem>>, vector<4x512xf32>
    tpu.vector_store %arg6[%c20, %c0_13], %25 {strides = array<i32>} : memref<36x512xf32, #tpu.memory_space<vmem>>, vector<4x512xf32>,
    %c497_i32 = arith.constant 497 : i32
    %27 = tpu.dynamic_rotate %0 by %c497_i32 dim 1 : vector<4x512xf32>, i32 -> vector<4x512xf32>
    %c6 = arith.constant 6 : index
    %c0_14 = arith.constant 0 : index
    %28 = vector.load %arg4[%c6, %c0_14] : memref<9x512xf32, #tpu.memory_space<vmem>>, vector<1x512xf32>
    %29 = vector.broadcast %28 : vector<1x512xf32> to vector<4x512xf32>
    %30 = arith.mulf %27, %29 : vector<4x512xf32>
    %c24 = arith.constant 24 : index
    %c0_15 = arith.constant 0 : index
    %31 = vector.load %arg6[%c24, %c0_15] : memref<36x512xf32, #tpu.memory_space<vmem>>, vector<4x512xf32>
    tpu.vector_store %arg6[%c24, %c0_15], %30 {strides = array<i32>} : memref<36x512xf32, #tpu.memory_space<vmem>>, vector<4x512xf32>,
    %c496_i32 = arith.constant 496 : i32
    %32 = tpu.dynamic_rotate %0 by %c496_i32 dim 1 : vector<4x512xf32>, i32 -> vector<4x512xf32>
    %c7 = arith.constant 7 : index
    %c0_16 = arith.constant 0 : index
    %33 = vector.load %arg4[%c7, %c0_16] : memref<9x512xf32, #tpu.memory_space<vmem>>, vector<1x512xf32>
    %34 = vector.broadcast %33 : vector<1x512xf32> to vector<4x512xf32>
    %35 = arith.mulf %32, %34 : vector<4x512xf32>
    %c28 = arith.constant 28 : index
    %c0_17 = arith.constant 0 : index
    %36 = vector.load %arg6[%c28, %c0_17] : memref<36x512xf32, #tpu.memory_space<vmem>>, vector<4x512xf32>
    tpu.vector_store %arg6[%c28, %c0_17], %35 {strides = array<i32>} : memref<36x512xf32, #tpu.memory_space<vmem>>, vector<4x512xf32>,
    %c495_i32 = arith.constant 495 : i32
    %37 = tpu.dynamic_rotate %0 by %c495_i32 dim 1 : vector<4x512xf32>, i32 -> vector<4x512xf32>
    %c8_18 = arith.constant 8 : index
    %c0_19 = arith.constant 0 : index
    %38 = vector.load %arg4[%c8_18, %c0_19] : memref<9x512xf32, #tpu.memory_space<vmem>>, vector<1x512xf32>
    %39 = vector.broadcast %38 : vector<1x512xf32> to vector<4x512xf32>
    %40 = arith.mulf %37, %39 : vector<4x512xf32>
    %c32 = arith.constant 32 : index
    %c0_20 = arith.constant 0 : index
    %41 = vector.load %arg6[%c32, %c0_20] : memref<36x512xf32, #tpu.memory_space<vmem>>, vector<4x512xf32>
    tpu.vector_store %arg6[%c32, %c0_20], %40 {strides = array<i32>} : memref<36x512xf32, #tpu.memory_space<vmem>>, vector<4x512xf32>,
    %c0_21 = arith.constant 0 : index
    %c0_22 = arith.constant 0 : index
    %42 = vector.load %arg2[%c0_21, %c0_22] : memref<4x36xf32, #tpu.memory_space<vmem>>, vector<4x36xf32>
    %c0_23 = arith.constant 0 : index
    %c0_24 = arith.constant 0 : index
    %43 = vector.load %arg6[%c0_23, %c0_24] : memref<36x512xf32, #tpu.memory_space<vmem>>, vector<36x512xf32>
    %cst = arith.constant dense<0.000000e+00> : vector<4x512xf32>
    %44 = tpu.matmul %42, %43, %cst {dimension_numbers = #tpu.dot_dimension_numbers<[1], [0], [0], [1], [0, 0, 1, 1], [], []>} : vector<4x36xf32>, vector<36x512xf32>, vector<4x512xf32> -> vector<4x512xf32>
    %cst_25 = arith.constant dense<0.000000e+00> : vector<4xf32>
    %45 = vector.multi_reduction <add>, %44, %cst_25 [1] : vector<4x512xf32> to vector<4xf32>
    %46 = vector.shape_cast %45 : vector<4xf32> to vector<4x1xf32>
    %cst_26 = arith.constant 0.001953125 : f32
    %47 = vector.broadcast %cst_26 : f32 to vector<4x1xf32>
    %48 = arith.mulf %46, %47 : vector<4x1xf32>
    %49 = vector.broadcast %48 : vector<4x1xf32> to vector<4x512xf32>
    %50 = arith.subf %44, %49 : vector<4x512xf32>
    %51 = arith.mulf %50, %50 : vector<4x512xf32>
    %cst_27 = arith.constant dense<0.000000e+00> : vector<4xf32>
    %52 = vector.multi_reduction <add>, %51, %cst_27 [1] : vector<4x512xf32> to vector<4xf32>
    %53 = vector.shape_cast %52 : vector<4xf32> to vector<4x1xf32>
    %cst_28 = arith.constant 0.00195694715 : f32
    %54 = vector.broadcast %cst_28 : f32 to vector<4x1xf32>
    %55 = arith.mulf %53, %54 : vector<4x1xf32>
    %56 = math.sqrt %55 : vector<4x1xf32>
    %cst_29 = arith.constant 1.000000e-03 : f32
    %57 = vector.broadcast %cst_29 : f32 to vector<4x1xf32>
    %58 = arith.addf %56, %57 : vector<4x1xf32>
    %cst_30 = arith.constant 1.000000e+00 : f32
    %59 = vector.broadcast %cst_30 : f32 to vector<4x1xf32>
    %60 = arith.divf %59, %58 : vector<4x1xf32>
    %61 = vector.broadcast %60 : vector<4x1xf32> to vector<4x512xf32>
    %62 = arith.mulf %50, %61 : vector<4x512xf32>
    %cst_31 = arith.constant 0.000000e+00 : f32
    %63 = vector.broadcast %cst_31 : f32 to vector<4x512xf32>
    %64 = arith.cmpf ogt, %62, %63 : vector<4x512xf32>
    %cst_32 = arith.constant 0.000000e+00 : f32
    %65 = vector.broadcast %cst_32 : f32 to vector<4x512xf32>
    %66 = arith.minimumf %62, %65 : vector<4x512xf32>
    %cst_33 = arith.constant 7.500000e-02 : f32
    %67 = vector.broadcast %cst_33 : f32 to vector<4x512xf32>
    %68 = arith.divf %66, %67 : vector<4x512xf32>
    %69 = math.exp %68 : vector<4x512xf32>
    %cst_34 = arith.constant 1.000000e+00 : f32
    %70 = vector.broadcast %cst_34 : f32 to vector<4x512xf32>
    %71 = arith.subf %69, %70 : vector<4x512xf32>
    %cst_35 = arith.constant 7.500000e-02 : f32
    %72 = vector.broadcast %cst_35 : f32 to vector<4x512xf32>
    %73 = arith.mulf %72, %71 : vector<4x512xf32>
    %74 = arith.select %64, %62, %73 : vector<4x512xi1>, vector<4x512xf32>
    %c17_i32_36 = arith.constant 17 : i32
    %75 = tpu.dynamic_rotate %74 by %c17_i32_36 dim 1 : vector<4x512xf32>, i32 -> vector<4x512xf32>
    %c0_37 = arith.constant 0 : index
    %c0_38 = arith.constant 0 : index
    %76 = vector.load %arg4[%c0_37, %c0_38] : memref<9x512xf32, #tpu.memory_space<vmem>>, vector<1x512xf32>
    %77 = vector.broadcast %76 : vector<1x512xf32> to vector<4x512xf32>
    %78 = arith.mulf %75, %77 : vector<4x512xf32>
    %c0_39 = arith.constant 0 : index
    %c0_40 = arith.constant 0 : index
    %79 = vector.load %arg6[%c0_39, %c0_40] : memref<36x512xf32, #tpu.memory_space<vmem>>, vector<4x512xf32>
    tpu.vector_store %arg6[%c0_39, %c0_40], %78 {strides = array<i32>} : memref<36x512xf32, #tpu.memory_space<vmem>>, vector<4x512xf32>,
    %c16_i32_41 = arith.constant 16 : i32
    %80 = tpu.dynamic_rotate %74 by %c16_i32_41 dim 1 : vector<4x512xf32>, i32 -> vector<4x512xf32>
    %c1_42 = arith.constant 1 : index
    %c0_43 = arith.constant 0 : index
    %81 = vector.load %arg4[%c1_42, %c0_43] : memref<9x512xf32, #tpu.memory_space<vmem>>, vector<1x512xf32>
    %82 = vector.broadcast %81 : vector<1x512xf32> to vector<4x512xf32>
    %83 = arith.mulf %80, %82 : vector<4x512xf32>
    %c4_44 = arith.constant 4 : index
    %c0_45 = arith.constant 0 : index
    %84 = vector.load %arg6[%c4_44, %c0_45] : memref<36x512xf32, #tpu.memory_space<vmem>>, vector<4x512xf32>
    tpu.vector_store %arg6[%c4_44, %c0_45], %83 {strides = array<i32>} : memref<36x512xf32, #tpu.memory_space<vmem>>, vector<4x512xf32>,
    %c15_i32_46 = arith.constant 15 : i32
    %85 = tpu.dynamic_rotate %74 by %c15_i32_46 dim 1 : vector<4x512xf32>, i32 -> vector<4x512xf32>
    %c2_47 = arith.constant 2 : index
    %c0_48 = arith.constant 0 : index
    %86 = vector.load %arg4[%c2_47, %c0_48] : memref<9x512xf32, #tpu.memory_space<vmem>>, vector<1x512xf32>
    %87 = vector.broadcast %86 : vector<1x512xf32> to vector<4x512xf32>
    %88 = arith.mulf %85, %87 : vector<4x512xf32>
    %c8_49 = arith.constant 8 : index
    %c0_50 = arith.constant 0 : index
    %89 = vector.load %arg6[%c8_49, %c0_50] : memref<36x512xf32, #tpu.memory_space<vmem>>, vector<4x512xf32>
    tpu.vector_store %arg6[%c8_49, %c0_50], %88 {strides = array<i32>} : memref<36x512xf32, #tpu.memory_space<vmem>>, vector<4x512xf32>,
    %c1_i32_51 = arith.constant 1 : i32
    %90 = tpu.dynamic_rotate %74 by %c1_i32_51 dim 1 : vector<4x512xf32>, i32 -> vector<4x512xf32>
    %c3_52 = arith.constant 3 : index
    %c0_53 = arith.constant 0 : index
    %91 = vector.load %arg4[%c3_52, %c0_53] : memref<9x512xf32, #tpu.memory_space<vmem>>, vector<1x512xf32>
    %92 = vector.broadcast %91 : vector<1x512xf32> to vector<4x512xf32>
    %93 = arith.mulf %90, %92 : vector<4x512xf32>
    %c12_54 = arith.constant 12 : index
    %c0_55 = arith.constant 0 : index
    %94 = vector.load %arg6[%c12_54, %c0_55] : memref<36x512xf32, #tpu.memory_space<vmem>>, vector<4x512xf32>
    tpu.vector_store %arg6[%c12_54, %c0_55], %93 {strides = array<i32>} : memref<36x512xf32, #tpu.memory_space<vmem>>, vector<4x512xf32>,
    %c16_56 = arith.constant 16 : index
    %c0_57 = arith.constant 0 : index
    %95 = vector.load %arg6[%c16_56, %c0_57] : memref<36x512xf32, #tpu.memory_space<vmem>>, vector<4x512xf32>
    tpu.vector_store %arg6[%c16_56, %c0_57], %74 {strides = array<i32>} : memref<36x512xf32, #tpu.memory_space<vmem>>, vector<4x512xf32>,
    %c511_i32_58 = arith.constant 511 : i32
    %96 = tpu.dynamic_rotate %74 by %c511_i32_58 dim 1 : vector<4x512xf32>, i32 -> vector<4x512xf32>
    %c5_59 = arith.constant 5 : index
    %c0_60 = arith.constant 0 : index
    %97 = vector.load %arg4[%c5_59, %c0_60] : memref<9x512xf32, #tpu.memory_space<vmem>>, vector<1x512xf32>
    %98 = vector.broadcast %97 : vector<1x512xf32> to vector<4x512xf32>
    %99 = arith.mulf %96, %98 : vector<4x512xf32>
    %c20_61 = arith.constant 20 : index
    %c0_62 = arith.constant 0 : index
    %100 = vector.load %arg6[%c20_61, %c0_62] : memref<36x512xf32, #tpu.memory_space<vmem>>, vector<4x512xf32>
    tpu.vector_store %arg6[%c20_61, %c0_62], %99 {strides = array<i32>} : memref<36x512xf32, #tpu.memory_space<vmem>>, vector<4x512xf32>,
    %c497_i32_63 = arith.constant 497 : i32
    %101 = tpu.dynamic_rotate %74 by %c497_i32_63 dim 1 : vector<4x512xf32>, i32 -> vector<4x512xf32>
    %c6_64 = arith.constant 6 : index
    %c0_65 = arith.constant 0 : index
    %102 = vector.load %arg4[%c6_64, %c0_65] : memref<9x512xf32, #tpu.memory_space<vmem>>, vector<1x512xf32>
    %103 = vector.broadcast %102 : vector<1x512xf32> to vector<4x512xf32>
    %104 = arith.mulf %101, %103 : vector<4x512xf32>
    %c24_66 = arith.constant 24 : index
    %c0_67 = arith.constant 0 : index
    %105 = vector.load %arg6[%c24_66, %c0_67] : memref<36x512xf32, #tpu.memory_space<vmem>>, vector<4x512xf32>
    tpu.vector_store %arg6[%c24_66, %c0_67], %104 {strides = array<i32>} : memref<36x512xf32, #tpu.memory_space<vmem>>, vector<4x512xf32>,
    %c496_i32_68 = arith.constant 496 : i32
    %106 = tpu.dynamic_rotate %74 by %c496_i32_68 dim 1 : vector<4x512xf32>, i32 -> vector<4x512xf32>
    %c7_69 = arith.constant 7 : index
    %c0_70 = arith.constant 0 : index
    %107 = vector.load %arg4[%c7_69, %c0_70] : memref<9x512xf32, #tpu.memory_space<vmem>>, vector<1x512xf32>
    %108 = vector.broadcast %107 : vector<1x512xf32> to vector<4x512xf32>
    %109 = arith.mulf %106, %108 : vector<4x512xf32>
    %c28_71 = arith.constant 28 : index
    %c0_72 = arith.constant 0 : index
    %110 = vector.load %arg6[%c28_71, %c0_72] : memref<36x512xf32, #tpu.memory_space<vmem>>, vector<4x512xf32>
    tpu.vector_store %arg6[%c28_71, %c0_72], %109 {strides = array<i32>} : memref<36x512xf32, #tpu.memory_space<vmem>>, vector<4x512xf32>,
    %c495_i32_73 = arith.constant 495 : i32
    %111 = tpu.dynamic_rotate %74 by %c495_i32_73 dim 1 : vector<4x512xf32>, i32 -> vector<4x512xf32>
    %c8_74 = arith.constant 8 : index
    %c0_75 = arith.constant 0 : index
    %112 = vector.load %arg4[%c8_74, %c0_75] : memref<9x512xf32, #tpu.memory_space<vmem>>, vector<1x512xf32>
    %113 = vector.broadcast %112 : vector<1x512xf32> to vector<4x512xf32>
    %114 = arith.mulf %111, %113 : vector<4x512xf32>
    %c32_76 = arith.constant 32 : index
    %c0_77 = arith.constant 0 : index
    %115 = vector.load %arg6[%c32_76, %c0_77] : memref<36x512xf32, #tpu.memory_space<vmem>>, vector<4x512xf32>
    tpu.vector_store %arg6[%c32_76, %c0_77], %114 {strides = array<i32>} : memref<36x512xf32, #tpu.memory_space<vmem>>, vector<4x512xf32>,
    %c0_78 = arith.constant 0 : index
    %c0_79 = arith.constant 0 : index
    %116 = vector.load %arg3[%c0_78, %c0_79] : memref<4x36xf32, #tpu.memory_space<vmem>>, vector<4x36xf32>
    %c0_80 = arith.constant 0 : index
    %c0_81 = arith.constant 0 : index
    %117 = vector.load %arg6[%c0_80, %c0_81] : memref<36x512xf32, #tpu.memory_space<vmem>>, vector<36x512xf32>
    %cst_82 = arith.constant dense<0.000000e+00> : vector<4x512xf32>
    %118 = tpu.matmul %116, %117, %cst_82 {dimension_numbers = #tpu.dot_dimension_numbers<[1], [0], [0], [1], [0, 0, 1, 1], [], []>} : vector<4x36xf32>, vector<36x512xf32>, vector<4x512xf32> -> vector<4x512xf32>
    %cst_83 = arith.constant dense<0.000000e+00> : vector<4xf32>
    %119 = vector.multi_reduction <add>, %118, %cst_83 [1] : vector<4x512xf32> to vector<4xf32>
    %120 = vector.shape_cast %119 : vector<4xf32> to vector<4x1xf32>
    %cst_84 = arith.constant 0.001953125 : f32
    %121 = vector.broadcast %cst_84 : f32 to vector<4x1xf32>
    %122 = arith.mulf %120, %121 : vector<4x1xf32>
    %123 = vector.broadcast %122 : vector<4x1xf32> to vector<4x512xf32>
    %124 = arith.subf %118, %123 : vector<4x512xf32>
    %125 = arith.mulf %124, %124 : vector<4x512xf32>
    %cst_85 = arith.constant dense<0.000000e+00> : vector<4xf32>
    %126 = vector.multi_reduction <add>, %125, %cst_85 [1] : vector<4x512xf32> to vector<4xf32>
    %127 = vector.shape_cast %126 : vector<4xf32> to vector<4x1xf32>
    %cst_86 = arith.constant 0.00195694715 : f32
    %128 = vector.broadcast %cst_86 : f32 to vector<4x1xf32>
    %129 = arith.mulf %127, %128 : vector<4x1xf32>
    %130 = math.sqrt %129 : vector<4x1xf32>
    %cst_87 = arith.constant 1.000000e-03 : f32
    %131 = vector.broadcast %cst_87 : f32 to vector<4x1xf32>
    %132 = arith.addf %130, %131 : vector<4x1xf32>
    %cst_88 = arith.constant 1.000000e+00 : f32
    %133 = vector.broadcast %cst_88 : f32 to vector<4x1xf32>
    %134 = arith.divf %133, %132 : vector<4x1xf32>
    %135 = vector.broadcast %134 : vector<4x1xf32> to vector<4x512xf32>
    %136 = arith.mulf %124, %135 : vector<4x512xf32>
    %137 = arith.addf %136, %0 : vector<4x512xf32>
    %cst_89 = arith.constant 0.000000e+00 : f32
    %138 = vector.broadcast %cst_89 : f32 to vector<4x512xf32>
    %139 = arith.cmpf ogt, %137, %138 : vector<4x512xf32>
    %cst_90 = arith.constant 0.000000e+00 : f32
    %140 = vector.broadcast %cst_90 : f32 to vector<4x512xf32>
    %141 = arith.minimumf %137, %140 : vector<4x512xf32>
    %cst_91 = arith.constant 7.500000e-02 : f32
    %142 = vector.broadcast %cst_91 : f32 to vector<4x512xf32>
    %143 = arith.divf %141, %142 : vector<4x512xf32>
    %144 = math.exp %143 : vector<4x512xf32>
    %cst_92 = arith.constant 1.000000e+00 : f32
    %145 = vector.broadcast %cst_92 : f32 to vector<4x512xf32>
    %146 = arith.subf %144, %145 : vector<4x512xf32>
    %cst_93 = arith.constant 7.500000e-02 : f32
    %147 = vector.broadcast %cst_93 : f32 to vector<4x512xf32>
    %148 = arith.mulf %147, %146 : vector<4x512xf32>
    %149 = arith.select %139, %137, %148 : vector<4x512xi1>, vector<4x512xf32>
    %c0_94 = arith.constant 0 : index
    %c0_95 = arith.constant 0 : index
    %150 = vector.load %arg5[%c0_94, %c0_95] : memref<4x512xf32, #tpu.memory_space<vmem>>, vector<4x512xf32>
    tpu.vector_store %arg5[%c0_94, %c0_95], %149 {strides = array<i32>} : memref<4x512xf32, #tpu.memory_space<vmem>>, vector<4x512xf32>,
    return
  }
  func.func @transform_0(%arg0: i32) -> (i32, i32) {
    %c0_i32 = arith.constant 0 : i32
    %c0_i32_0 = arith.constant 0 : i32
    %c0_i32_1 = arith.constant 0 : i32
    return %c0_i32, %c0_i32_0 : i32, i32
  }
  func.func @transform_1(%arg0: i32) -> (i32, i32) {
    %c0_i32 = arith.constant 0 : i32
    %c0_i32_0 = arith.constant 0 : i32
    %c0_i32_1 = arith.constant 0 : i32
    return %c0_i32, %c0_i32_0 : i32, i32
  }
  func.func @transform_2(%arg0: i32) -> (i32, i32) {
    %c0_i32 = arith.constant 0 : i32
    %c0_i32_0 = arith.constant 0 : i32
    %c0_i32_1 = arith.constant 0 : i32
    return %c0_i32, %c0_i32_0 : i32, i32
  }
  func.func @transform_3(%arg0: i32) -> (i32, i32) {
    %c0_i32 = arith.constant 0 : i32
    %c0_i32_0 = arith.constant 0 : i32
    %c0_i32_1 = arith.constant 0 : i32
    return %c0_i32, %c0_i32_0 : i32, i32
  }
  func.func @transform_4(%arg0: i32) -> (i32, i32) {
    %c0_i32 = arith.constant 0 : i32
    %c0_i32_0 = arith.constant 0 : i32
    %c0_i32_1 = arith.constant 0 : i32
    return %c0_i32, %c0_i32_0 : i32, i32
  }
}

</mosaic_0001>

<bundles_post_ra>
// kernel: tpu_custom_call.1
= control target key start
LH: loop header
LB: loop body
LE: loop exit
PB: predicated region body
PF: predicated region fallthrough
CT: control target
= control target key end

     0   :  { %9 = vsyncpa [#allocation4], 0  ;;  %s2164_s0 = inlined_call_operand.hbm [shape: f32[4,512], index: 0, kind: input, shape index: {}]   ;;  %s2165_s1 = inlined_call_operand.hbm [shape: f32[4,36], index: 1, kind: input, shape index: {}]   ;;  %s2166_s2 = inlined_call_operand.hbm [shape: f32[4,36], index: 2, kind: input, shape index: {}]   ;;  %s2167_s3 = inlined_call_operand.hbm [shape: f32[9,512], index: 3, kind: input, shape index: {}]   ;;  %s2168_s4 = inlined_call_operand.hbm [shape: f32[4,512], index: 4, kind: output, shape index: {}]  }
   0x1   :  { %10 = vsyncpa [#allocation7], 0 }
   0x2   :  { %11 = vsyncpa [#allocation10], 0 }
   0x3   :  { %12 = vsyncpa [#allocation5], 0  ;;  %s1576_s15 = smov [#allocation6]   ;;  %s1577_s17 = smov [#allocation3]  }
   0x4   :  { %s29_s16 = sshll.u32 %s1576_s15, 4  ;;  %s19_s18 = sshll.u32 %s1577_s17, 4  ;;  %s30_s16 = int_to_ptr.vmem [resolvable:$true] %s29_s16  ;;  %s20_s18 = int_to_ptr.vmem [resolvable:$true] %s19_s18 }
   0x5   :  { %s1476_s19 = scalar_lea.vmem %s30_s16, 64  ;;  %p1481_p1 = scmp.lt.s32.totalorder %s30_s16, %s30_s16 }
   0x6   :  { %p1477_p0 = scmp.ne.s32.totalorder %s30_s16, %s1476_s19  ;;  %p1482_p2 = scmp.lt.s32.totalorder %s1476_s19, %s1476_s19 }
   0x8   :  { %p1483_p3 = por %p1482_p2, %p1481_p1 }
   0xa   :  { %p1484_p4 = pnand %p1483_p3, %p1477_p0 }
   0xc   :  { %1487 = shalt.err (!%p1484_p4)
}
   0xd   :  { %32 = dma.hbm_to_vmem [thread:$0]  %s2165_s1, 64, %s30_s16, [#allocation7]  }
   0xe   :  { %s1496_s22 = scalar_lea.vmem %s20_s18, 256  ;;  %p1501_p6 = scmp.lt.s32.totalorder %s20_s18, %s20_s18 }
   0xf   :  { %p1497_p5 = scmp.ne.s32.totalorder %s20_s18, %s1496_s22  ;;  %p1502_p7 = scmp.lt.s32.totalorder %s1496_s22, %s1496_s22 }
  0x11   :  { %p1503_p8 = por %p1502_p7, %p1501_p6 }
  0x13   :  { %p1504_p9 = pnand %p1503_p8, %p1497_p5 }
  0x15   :  { %1507 = shalt.err (!%p1504_p9)
}
  0x16   :  { %22 = dma.hbm_to_vmem [thread:$0]  %s2164_s0, 256, %s20_s18, [#allocation4]  }
  0x17   :  { %s1578_s25 = smov [#allocation8]   ;;  %s1579_s27 = smov [#allocation9]  }
  0x18   :  { %s39_s26 = sshll.u32 %s1578_s25, 4  ;;  %s48_s28 = sshll.u32 %s1579_s27, 4  ;;  %s40_s26 = int_to_ptr.vmem [resolvable:$true] %s39_s26  ;;  %s49_s28 = int_to_ptr.vmem [resolvable:$true] %s48_s28 }
  0x19   :  { %s1516_s29 = scalar_lea.vmem %s40_s26, 64  ;;  %p1521_p11 = scmp.lt.s32.totalorder %s40_s26, %s40_s26 }
  0x1a   :  { %p1517_p10 = scmp.ne.s32.totalorder %s40_s26, %s1516_s29  ;;  %p1522_p12 = scmp.lt.s32.totalorder %s1516_s29, %s1516_s29 }
  0x1c   :  { %p1523_p13 = por %p1522_p12, %p1521_p11 }
  0x1e   :  { %p1524_p0 = pnand %p1523_p13, %p1517_p10 }
  0x20   :  { %1527 = shalt.err (!%p1524_p0)
}
  0x21   :  { %42 = dma.hbm_to_vmem [thread:$0]  %s2166_s2, 64, %s40_s26, [#allocation7]  }
  0x22   :  { %s1536_s5 = scalar_lea.vmem %s49_s28, 1024  ;;  %p1541_p2 = scmp.lt.s32.totalorder %s49_s28, %s49_s28 }
  0x23   :  { %p1537_p1 = scmp.ne.s32.totalorder %s49_s28, %s1536_s5  ;;  %p1542_p3 = scmp.lt.s32.totalorder %s1536_s5, %s1536_s5 }
  0x25   :  { %p1543_p4 = por %p1542_p3, %p1541_p2 }
  0x27   :  { %p1544_p5 = pnand %p1543_p4, %p1537_p1 }
  0x29   :  { %1547 = shalt.err (!%p1544_p5)
}
  0x2a   :  { %s1580_s0 = smov 512   ;;  %s1581_s6 = smov 32  }
  0x2b   :  { %54 = dma.hbm_to_vmem [thread:$0]  %s2167_s3, 1024, %s49_s28, [#allocation10], %s1580_s0, %s1580_s0, %s1581_s6  }
  0x2c   :  { %1568 = dma.done.wait [#allocation4], 256  }
  0x2d   :  { %1569 = vsyncadd [#allocation4], 4294967040 }
  0x2e   :  { %1570 = dma.done.wait [#allocation7], 128  }
  0x2f   :  { %1571 = vsyncadd [#allocation7], 4294967168 }
  0x30   :  { %1572 = dma.done.wait [#allocation10], 1024  }
  0x31   :  { %1573 = vsyncadd [#allocation10], 4294966272  ;;  %v1629_v0 = vld [vmem:[#allocation3 + $0x8] sm:$0xff]  ;;  %v1631_v1 = vld [vmem:[#allocation3] sm:$0xff]  ;;  %s1582_s2 = smov 111   ;;  %s1583_s9 = smov 112   ;;  %v83_v5 = vlaneseq }
  0x32   :  { %440 = vrot.lane.b32.xlu1 %v1629_v0, %s1582_s2  ;;  %278 = vst [vmem:[#allocation2 + $0x28] sm:$0xf] %v1629_v0  ;;  %384 = vrot.lane.b32.xlu0 %v1629_v0, %s1583_s9  ;;  %276 = vst [vmem:[#allocation2 + $0x8] sm:$0xf] %v1631_v1  ;;  %v1641_v2 = vcombine.high %v1631_v1, %v1631_v1  ;;  %v1645_v3 = vcombine.high %v1629_v0, %v1629_v0  ;;  %s1584_s3 = smov 127   ;;  %s1585_s10 = smov 113  }
  0x33   :  { %s1586_s11 = smov 1   ;;  %s1587_s12 = smov 16   ;;  %v1590_v4 = vmov 0.0   ;;  %v93_v6 = vshrl.u32 %v83_v5, 7  ;;  %v1715_v9 = vand.u32 127, %v83_v5  ;;  %vm505_vm4 = vcmask 1043456  }
  0x34   :  { %277 = vst [vmem:[#allocation2 + $0x88] sm:$0xf] %v1641_v2  ;;  %279 = vst [vmem:[#allocation2 + $0x40] sm:$0xf] %v1645_v3  ;;  %s1588_s13 = smov 15   ;;  %s1589_s14 = smov 17   ;;  %582 = vmatprep.mubr.f32.mxu0 %v1590_v4  ;;  %653 = vmatprep.mubr.f32.mxu1 %v1590_v4 }
  0x35   :  { %v1717_v10 = vsub.s32 0, %v93_v6  ;;  %v1719_v11 = vsub.s32 1, %v93_v6  ;;  %v1721_v12 = vld [vmem:[#allocation9 + $0x20] ss:$8 sm:$0xf]  ;;  %vm444_vm0 = vcmp.lt.s32.totalorder %v1715_v9, 111 }
  0x36   :  { %436 = vrot.lane.b32.xlu1 %v1631_v1, %s1582_s2  ;;  %380 = vrot.lane.b32.xlu0 %v1631_v1, %s1583_s9  ;;  %v1723_v13 = vld [vmem:[#allocation9 + $0x7] ss:$8 sm:$0xf]  ;;  %vm388_vm1 = vcmp.lt.s32.totalorder %v1715_v9, 112  ;;  %vm288_vm2 = vcmp.lt.s32.totalorder %v1715_v9, 127  ;;  %vm344_vm3 = vcmp.lt.s32.totalorder %v1715_v9, 113 }
  0x37   :  { %v1731_v16 = vld [vmem:[#allocation9 + $0x5] ss:$8 sm:$0xf]  ;;  %v455_v17 = vrot.slane %v1721_v12, %v1717_v10  ;;  %v459_v18 = vrot.slane %v1721_v12, %v1719_v11  ;;  %v399_v19 = vrot.slane %v1723_v13, %v1717_v10  ;;  %v403_v20 = vrot.slane %v1723_v13, %v1719_v11  ;;  %v1756_v32 = vld [vmem:[#allocation9 + $0x6] ss:$8 sm:$0xf] }
  0x38   :  { %v303_v23 = vrot.slane %v1731_v16, %v1719_v11  ;;  %v359_v39 = vrot.slane %v1756_v32, %v1719_v11  ;;  %v355_v45 = vrot.slane %v1756_v32, %v1717_v10  ;;  %v299_v46 = vrot.slane %v1731_v16, %v1717_v10  ;;  %v1775_v47 = vld [vmem:[#allocation9 + $0x3] ss:$8 sm:$0xf]  ;;  %s1591_s15 = smov [#allocation11]  }
  0x39   :  { %v1782_v52 = vsub.s32 2, %v93_v6  ;;  %v1784_v53 = vsub.s32 3, %v93_v6  ;;  %vm228_vm5 = vcmp.lt.s32.totalorder %v1715_v9, 1  ;;  %v243_v58 = vrot.slane %v1775_v47, %v1719_v11  ;;  %s1395_s16 = sshll.u32 %s1591_s15, 4  ;;  %s1396_s16 = int_to_ptr.vmem [resolvable:$true] %s1395_s16 }
  0x3a   :  { %438 = vrot.lane.b32.xlu1 %v1641_v2, %s1582_s2  ;;  %382 = vrot.lane.b32.xlu0 %v1641_v2, %s1583_s9  ;;  %vm128_vm6 = vcmp.lt.s32.totalorder %v1715_v9, 16  ;;  %vm184_vm7 = vcmp.lt.s32.totalorder %v1715_v9, 15  ;;  %vm85_vm8 = vcmp.lt.s32.totalorder %v1715_v9, 17  ;;  %vm501_vm9 = vcmask 293888   ;;  %s1548_s17 = scalar_lea.vmem %s1396_s16, 256  ;;  %p1553_p7 = scmp.lt.s32.totalorder %s1396_s16, %s1396_s16 }
  0x3b   :  { %v463_v63 = vrot.slane %v1721_v12, %v1782_v52  ;;  %v467_v6 = vrot.slane %v1721_v12, %v1784_v53  ;;  %p1549_p6 = scmp.ne.s32.totalorder %s1396_s16, %s1548_s17  ;;  %p1554_p8 = scmp.lt.s32.totalorder %s1548_s17, %s1548_s17 }
  0x3d   :  { %p1555_p9 = por %p1554_p8, %p1553_p7 }
  0x3e   :  { %284 = vrot.lane.b32.xlu1 %v1629_v0, %s1584_s3  ;;  %282 = vrot.lane.b32.xlu0 %v1641_v2, %s1584_s3 }
  0x3f   :  { %p1556_p10 = pnand %p1555_p9, %p1549_p6 }
  0x42   :  { %340 = vrot.lane.b32.xlu1 %v1629_v0, %s1585_s10  ;;  %338 = vrot.lane.b32.xlu0 %v1641_v2, %s1585_s10 }
  0x46   :  { %336 = vrot.lane.b32.xlu1 %v1631_v1, %s1585_s10  ;;  %280 = vrot.lane.b32.xlu0 %v1631_v1, %s1584_s3 }
  0x4a   :  { %222 = vrot.lane.b32.xlu1 %v1641_v2, %s1586_s11  ;;  %220 = vrot.lane.b32.xlu0 %v1631_v1, %s1586_s11 }
  0x4e   :  { %442 = vrot.lane.b32.xlu1 %v1645_v3, %s1582_s2  ;;  %386 = vrot.lane.b32.xlu0 %v1645_v3, %s1583_s9 }
  0x52   :  { %120 = vrot.lane.b32.xlu1 %v1631_v1, %s1587_s12  ;;  %226 = vrot.lane.b32.xlu0 %v1645_v3, %s1586_s11 }
  0x56   :  { %176 = vrot.lane.b32.xlu1 %v1631_v1, %s1588_s13  ;;  %122 = vrot.lane.b32.xlu0 %v1641_v2, %s1587_s12 }
  0x5a   :  { %286 = vrot.lane.b32.xlu1 %v1645_v3, %s1584_s3  ;;  %178 = vrot.lane.b32.xlu0 %v1641_v2, %s1588_s13 }
  0x5e   :  { %126 = vrot.lane.b32.xlu1 %v1645_v3, %s1587_s12  ;;  %342 = vrot.lane.b32.xlu0 %v1645_v3, %s1585_s10 }
  0x62   :  { %75 = vrot.lane.b32.xlu1 %v1631_v1, %s1589_s14  ;;  %182 = vrot.lane.b32.xlu0 %v1645_v3, %s1588_s13 }
  0x66   :  { %224 = vrot.lane.b32.xlu1 %v1629_v0, %s1586_s11  ;;  %77 = vrot.lane.b32.xlu0 %v1641_v2, %s1589_s14 }
  0x6a   :  { %124 = vrot.lane.b32.xlu1 %v1629_v0, %s1587_s12  ;;  %81 = vrot.lane.b32.xlu0 %v1645_v3, %s1589_s14 }
  0x6e   :  { %79 = vrot.lane.b32.xlu1 %v1629_v0, %s1589_s14  ;;  %180 = vrot.lane.b32.xlu0 %v1629_v0, %s1588_s13 }
  0xa4   :  { %v1711_v7 = vpop.permute.xlu1 %440  ;;  %v1713_v8 = vpop.permute.xlu0 %384 }
  0xa8   :  { %v1725_v14 = vpop.permute.xlu1 %436  ;;  %v1727_v15 = vpop.permute.xlu0 %380 }
  0xac   :  { %v439_v21 = vpop.permute.xlu1 %438  ;;  %v383_v22 = vpop.permute.xlu0 %382 }
  0xad   :  { %v446_v24 = vsel %vm444_vm0, %v439_v21, %v1711_v7  ;;  %v447_v25 = vsel %vm444_vm0, %v1725_v14, %v439_v21  ;;  %v390_v26 = vsel %vm388_vm1, %v383_v22, %v1713_v8  ;;  %v391_v27 = vsel %vm388_vm1, %v1727_v15, %v383_v22 }
  0xae   :  { %v472_v28 = vmul.f32 %v455_v17, %v447_v25  ;;  %v473_v29 = vmul.f32 %v459_v18, %v446_v24  ;;  %v416_v30 = vmul.f32 %v399_v19, %v391_v27  ;;  %v417_v31 = vmul.f32 %v403_v20, %v390_v26 }
  0xaf   :  { %v407_v17 = vrot.slane %v1723_v13, %v1782_v52  ;;  %v411_v18 = vrot.slane %v1723_v13, %v1784_v53 }
  0xb0   :  { %476 = vst [vmem:[#allocation2 + $0x20] sm:$0xf] %v472_v28  ;;  %477 = vst [vmem:[#allocation2 + $0x48] sm:$0xf] %v473_v29  ;;  %v424_v33 = vrot.slane %v416_v30, 4  ;;  %v425_v34 = vrot.slane %v417_v31, 4  ;;  %v1758_v35 = vpop.permute.xlu1 %284  ;;  %v283_v36 = vpop.permute.xlu0 %282 }
  0xb1   :  { %v290_v37 = vsel %vm288_vm2, %v283_v36, %v1758_v35  ;;  %v1823_v31 = vld [vmem:[#allocation9 + $0x1] ss:$8 sm:$0xf] }
  0xb2   :  { %432 = vst [vmem:[#allocation2 + $0x58] sm:$0xf0] %v424_v33  ;;  %433 = vst [vmem:[#allocation2 + $0x10] sm:$0xf0] %v425_v34  ;;  %v317_v38 = vmul.f32 %v303_v23, %v290_v37  ;;  %v239_v23 = vrot.slane %v1775_v47, %v1717_v10 }
  0xb4   :  { %v325_v40 = vrot.slane %v317_v38, 4  ;;  %v1766_v41 = vpop.permute.xlu1 %340  ;;  %v339_v42 = vpop.permute.xlu0 %338  ;;  %v143_v38 = vrot.slane %v1823_v31, %v1719_v11 }
  0xb5   :  { %v346_v43 = vsel %vm344_vm3, %v339_v42, %v1766_v41 }
  0xb6   :  { %333 = vst [vmem:[#allocation2 + $0x88] sm:$0xf0] %v325_v40  ;;  %v373_v44 = vmul.f32 %v359_v39, %v346_v43  ;;  %v1833_v39 = vld [vmem:[#allocation9 + $0x2] ss:$8 sm:$0xf] }
  0xb7   :  { %v498_v48 = vld [vmem:[#allocation2 + $0x48] sm:$0xf]  ;;  %v497_v49 = vld [vmem:[#allocation2 + $0x20] sm:$0xf] }
  0xb8   :  { %377 = vst [vmem:[#allocation2 + $0x10] sm:$0xf] %v373_v44  ;;  %1406 = vmatprep.subr.msk.mxu0 %vm505_vm4, %v498_v48  ;;  %v1778_v50 = vpop.permute.xlu1 %336  ;;  %v1780_v51 = vpop.permute.xlu0 %280  ;;  %v311_v48 = vrot.slane %v1731_v16, %v1784_v53 }
  0xb9   :  { %v347_v54 = vsel %vm344_vm3, %v1778_v50, %v339_v42  ;;  %v291_v55 = vsel %vm288_vm2, %v1780_v51, %v283_v36  ;;  %1407 = vmatpush1.msk.msra.mxu0 %vm505_vm4, %v497_v49  ;;  %v199_v49 = vrot.slane %v1833_v39, %v1719_v11 }
  0xba   :  { %v372_v56 = vmul.f32 %v355_v45, %v347_v54  ;;  %v316_v57 = vmul.f32 %v299_v46, %v291_v55  ;;  %v307_v45 = vrot.slane %v1731_v16, %v1782_v52 }
  0xbc   :  { %376 = vst [vmem:[#allocation2 + $0x58] sm:$0xf] %v372_v56  ;;  %v324_v59 = vrot.slane %v316_v57, 4  ;;  %v1796_v60 = vpop.permute.xlu1 %222  ;;  %v221_v61 = vpop.permute.xlu0 %220 }
  0xbd   :  { %v231_v62 = vsel %vm228_vm5, %v221_v61, %v1796_v60 }
  0xbe   :  { %332 = vst [vmem:[#allocation2 + $0x8] sm:$0xf0] %v324_v59  ;;  %v257_v5 = vmul.f32 %v243_v58, %v231_v62  ;;  %v139_v59 = vrot.slane %v1823_v31, %v1717_v10 }
  0xbf   :  { %v494_v19 = vld [vmem:[#allocation2 + $0x10] sm:$0xff] }
  0xc0   :  { %v265_v20 = vrot.slane %v257_v5, 4  ;;  %v443_v21 = vpop.permute.xlu1 %442  ;;  %542 = vmatprep.subr.mxu0 %v494_v19  ;;  %v387_v22 = vpop.permute.xlu0 %386 }
  0xc1   :  { %v445_v24 = vsel %vm444_vm0, %v1711_v7, %v443_v21  ;;  %v448_v12 = vsel %vm444_vm0, %v443_v21, %v1725_v14  ;;  %v389_v13 = vsel %vm388_vm1, %v1713_v8, %v387_v22  ;;  %v392_v25 = vsel %vm388_vm1, %v387_v22, %v1727_v15  ;;  %v490_v8 = vld [vmem:[#allocation2 + $0x88] sm:$0xff] }
  0xc2   :  { %273 = vst [vmem:[#allocation2 + $0x68] sm:$0xf0] %v265_v20  ;;  %v474_v26 = vmul.f32 %v463_v63, %v445_v24  ;;  %v475_v27 = vmul.f32 %v467_v6, %v448_v12  ;;  %v418_v28 = vmul.f32 %v407_v17, %v389_v13  ;;  %v419_v29 = vmul.f32 %v411_v18, %v392_v25  ;;  %v1876_v25 = vld [vmem:[#allocation9] ss:$8 sm:$0xf] }
  0xc3   :  { %v493_v30 = vld [vmem:[#allocation2 + $0x58] sm:$0xff]  ;;  %v363_v63 = vrot.slane %v1756_v32, %v1782_v52  ;;  %v195_v13 = vrot.slane %v1833_v39, %v1717_v10 }
  0xc4   :  { %478 = vst [vmem:[#allocation2 + $0x70] sm:$0xf] %v474_v26  ;;  %479 = vst [vmem:[#allocation2 + $0x90] sm:$0xf] %v475_v27  ;;  %v426_v7 = vrot.slane %v418_v28, 4  ;;  %v427_v14 = vrot.slane %v419_v29, 4  ;;  %v121_v33 = vpop.permute.xlu1 %120  ;;  %543 = vmatpush1.msra.mxu0 %v493_v30  ;;  %v1825_v34 = vpop.permute.xlu0 %226  ;;  %v251_v30 = vrot.slane %v1775_v47, %v1784_v53 }
  0xc5   :  { %v232_v15 = vsel %vm228_vm5, %v1825_v34, %v221_v61  ;;  %544 = vmatprep.subr.mxu0 %v490_v8  ;;  %v489_v36 = vld [vmem:[#allocation2 + $0x8] sm:$0xff] }
  0xc6   :  { %434 = vst [vmem:[#allocation2 + $0x98] sm:$0xf0] %v426_v7  ;;  %435 = vst [vmem:[#allocation2 + $0x60] sm:$0xf0] %v427_v14  ;;  %v256_v37 = vmul.f32 %v239_v23, %v232_v15  ;;  %545 = vmatpush1.msra.mxu0 %v489_v36  ;;  %v99_v7 = vrot.slane %v1876_v25, %v1719_v11  ;;  %v147_v15 = vrot.slane %v1823_v31, %v1782_v52 }
  0xc8   :  { %v264_v40 = vrot.slane %v256_v37, 4  ;;  %v177_v42 = vpop.permute.xlu1 %176  ;;  %v1835_v43 = vpop.permute.xlu0 %122 }
  0xc9   :  { %v131_v44 = vsel %vm128_vm6, %v121_v33, %v1835_v43 }
  0xca   :  { %272 = vst [vmem:[#allocation2 + $0x30] sm:$0xf0] %v264_v40  ;;  %v157_v46 = vmul.f32 %v143_v38, %v131_v44  ;;  %v151_v38 = vrot.slane %v1823_v31, %v1784_v53  ;;  %v107_v31 = vrot.slane %v1876_v25, %v1784_v53 }
  0xcb   :  { %v500_v54 = vld [vmem:[#allocation2 + $0x90] sm:$0xf] }
  0xcc   :  { %v499_v55 = vld [vmem:[#allocation2 + $0x70] sm:$0xf]  ;;  %v165_v56 = vrot.slane %v157_v46, 4  ;;  %1409 = vmatprep.subr.msk.mxu1 %vm505_vm4, %v500_v54  ;;  %v287_v57 = vpop.permute.xlu1 %286  ;;  %v1848_v58 = vpop.permute.xlu0 %178 }
  0xcd   :  { %v289_v16 = vsel %vm288_vm2, %v1758_v35, %v287_v57  ;;  %v292_v61 = vsel %vm288_vm2, %v287_v57, %v1780_v51  ;;  %v187_v62 = vsel %vm184_vm7, %v177_v42, %v1848_v58  ;;  %1410 = vmatpush1.msk.msra.mxu1 %vm505_vm4, %v499_v55  ;;  %v367_v35 = vrot.slane %v1756_v32, %v1784_v53 }
  0xce   :  { %173 = vst [vmem:[#allocation2 + $0x38] sm:$0xf0] %v165_v56  ;;  %v318_v5 = vmul.f32 %v307_v45, %v289_v16  ;;  %v319_v6 = vmul.f32 %v311_v48, %v292_v61  ;;  %v213_v17 = vmul.f32 %v199_v49, %v187_v62  ;;  %v95_v45 = vrot.slane %v1876_v25, %v1717_v10 }
  0xcf   :  { %v103_v55 = vrot.slane %v1876_v25, %v1782_v52  ;;  %v203_v61 = vrot.slane %v1833_v39, %v1782_v52  ;;  %v480_v25 = vld [vmem:[#allocation6] sm:$0xf] }
  0xd0   :  { %v326_v18 = vrot.slane %v318_v5, 4  ;;  %v327_v19 = vrot.slane %v319_v6, 4  ;;  %217 = vst [vmem:[#allocation2 + $0x68] sm:$0xf] %v213_v17  ;;  %v127_v51 = vpop.permute.xlu1 %126  ;;  %v343_v20 = vpop.permute.xlu0 %342  ;;  %v207_v17 = vrot.slane %v1833_v39, %v1784_v53 }
  0xd1   :  { %v132_v21 = vsel %vm128_vm6, %v127_v51, %v121_v33  ;;  %v345_v22 = vsel %vm344_vm3, %v1766_v41, %v343_v20  ;;  %v348_v23 = vsel %vm344_vm3, %v343_v20, %v1778_v50  ;;  %v247_v50 = vrot.slane %v1775_v47, %v1782_v52 }
  0xd2   :  { %334 = vst [vmem:[#allocation2 + $0x28] sm:$0xf0] %v326_v18  ;;  %335 = vst [vmem:[#allocation2 + $0x40] sm:$0xf0] %v327_v19  ;;  %v156_v24 = vmul.f32 %v139_v59, %v132_v21  ;;  %v374_v32 = vmul.f32 %v363_v63, %v345_v22  ;;  %v375_v12 = vmul.f32 %v367_v35, %v348_v23 }
  0xd4   :  { %v164_v26 = vrot.slane %v156_v24, 4  ;;  %378 = vst [vmem:[#allocation2 + $0x98] sm:$0xf] %v374_v32  ;;  %379 = vst [vmem:[#allocation2 + $0x60] sm:$0xf] %v375_v12  ;;  %v76_v27 = vpop.permute.xlu1 %75  ;;  %v183_v28 = vpop.permute.xlu0 %182 }
  0xd5   :  { %v188_v41 = vsel %vm184_vm7, %v183_v28, %v177_v42 }
  0xd6   :  { %172 = vst [vmem:[#allocation2] sm:$0xf0] %v164_v26  ;;  %v212_v29 = vmul.f32 %v195_v13, %v188_v41 }
  0xd7   :  { %v486_v14 = vld [vmem:[#allocation2 + $0x68] sm:$0xff] }
  0xd8   :  { %216 = vst [vmem:[#allocation2 + $0x30] sm:$0xf] %v212_v29  ;;  %v225_v33 = vpop.permute.xlu1 %224  ;;  %v78_v8 = vpop.permute.xlu0 %77  ;;  %546 = vmatprep.subr.mxu0 %v486_v14 }
  0xd9   :  { %v229_v36 = vsel %vm228_vm5, %v225_v33, %v1825_v34  ;;  %v230_v47 = vsel %vm228_vm5, %v1796_v60, %v225_v33  ;;  %v88_v37 = vsel %vm85_vm8, %v76_v27, %v78_v8  ;;  %v492_v16 = vld [vmem:[#allocation2 + $0x40] sm:$0xff]  ;;  %v491_v6 = vld [vmem:[#allocation2 + $0x28] sm:$0xff] }
  0xda   :  { %v258_v40 = vmul.f32 %v247_v50, %v230_v47  ;;  %v259_v42 = vmul.f32 %v251_v30, %v229_v36  ;;  %v113_v44 = vmul.f32 %v99_v7, %v88_v37 }
  0xdb   :  { %v496_v46 = vld [vmem:[#allocation2 + $0x60] sm:$0xff]  ;;  %v495_v48 = vld [vmem:[#allocation2 + $0x98] sm:$0xff] }
  0xdc   :  { %v266_v49 = vrot.slane %v258_v40, 4  ;;  %v267_v34 = vrot.slane %v259_v42, 4  ;;  %117 = vst [vmem:[#allocation2 + $0x38] sm:$0xf] %v113_v44  ;;  %v125_v54 = vpop.permute.xlu1 %124  ;;  %613 = vmatprep.subr.mxu1 %v496_v46  ;;  %v82_v60 = vpop.permute.xlu0 %81 }
  0xdd   :  { %v129_v56 = vsel %vm128_vm6, %v125_v54, %v127_v51  ;;  %v130_v57 = vsel %vm128_vm6, %v1835_v43, %v125_v54  ;;  %v89_v59 = vsel %vm85_vm8, %v82_v60, %v76_v27  ;;  %614 = vmatpush1.msra.mxu1 %v495_v48 }
  0xde   :  { %274 = vst [vmem:[#allocation2 + $0x78] sm:$0xf0] %v266_v49  ;;  %275 = vst [vmem:[#allocation2 + $0x80] sm:$0xf0] %v267_v34  ;;  %v158_v62 = vmul.f32 %v147_v15, %v130_v57  ;;  %v159_v63 = vmul.f32 %v151_v38, %v129_v56  ;;  %v112_v5 = vmul.f32 %v95_v45, %v89_v59  ;;  %615 = vmatprep.subr.mxu1 %v492_v16 }
  0xdf   :  { %616 = vmatpush1.msra.mxu1 %v491_v6  ;;  %v485_v43 = vld [vmem:[#allocation2 + $0x30] sm:$0xff] }
  0xe0   :  { %v166_v35 = vrot.slane %v158_v62, 4  ;;  %v167_v18 = vrot.slane %v159_v63, 4  ;;  %116 = vst [vmem:[#allocation2] sm:$0xf] %v112_v5  ;;  %v80_v19 = vpop.permute.xlu1 %79  ;;  %v181_v51 = vpop.permute.xlu0 %180  ;;  %547 = vmatpush1.msra.mxu0 %v485_v43 }
  0xe1   :  { %v86_v20 = vsel %vm85_vm8, %v80_v19, %v82_v60  ;;  %v87_v21 = vsel %vm85_vm8, %v78_v8, %v80_v19  ;;  %v185_v22 = vsel %vm184_vm7, %v181_v51, %v183_v28  ;;  %v186_v39 = vsel %vm184_vm7, %v1848_v58, %v181_v51 }
  0xe2   :  { %174 = vst [vmem:[#allocation2 + $0x50] sm:$0xf0] %v166_v35  ;;  %175 = vst [vmem:[#allocation2 + $0x18] sm:$0xf0] %v167_v18  ;;  %v114_v23 = vmul.f32 %v103_v55, %v87_v21  ;;  %v115_v24 = vmul.f32 %v107_v31, %v86_v20  ;;  %v214_v32 = vmul.f32 %v203_v61, %v186_v39 }
  0xe3   :  { %v215_v12 = vmul.f32 %v207_v17, %v185_v22  ;;  %v482_v13 = vld [vmem:[#allocation2 + $0x38] sm:$0xff] }
  0xe4   :  { %118 = vst [vmem:[#allocation2 + $0x50] sm:$0xf] %v114_v23  ;;  %119 = vst [vmem:[#allocation2 + $0x18] sm:$0xf] %v115_v24  ;;  %548 = vmatprep.subr.mxu0 %v482_v13 }
  0xe5   :  { %218 = vst [vmem:[#allocation2 + $0x78] sm:$0xf] %v214_v32  ;;  %219 = vst [vmem:[#allocation2 + $0x80] sm:$0xf] %v215_v12 }
  0xe7   :  { %v481_v26 = vld [vmem:[#allocation2] sm:$0xff] }
  0xe8   :  { %549 = vmatpush1.msra.mxu0 %v481_v26 }
  0xe9   :  { %1408 = vmatmul.mubr.msk.f32.vlgmr.msra.gmra.mxu0 %vm501_vm9, %v480_v25 }
  0xea   :  { %1223 = vmatprep.mubr.f32.mxu0 %v1590_v4 }
  0xeb   :  { %v484_v28 = vld [vmem:[#allocation2 + $0x18] sm:$0xff]  ;;  %v483_v41 = vld [vmem:[#allocation2 + $0x50] sm:$0xff] }
  0xec   :  { %v488_v58 = vld [vmem:[#allocation2 + $0x80] sm:$0xff]  ;;  %v487_v27 = vld [vmem:[#allocation2 + $0x78] sm:$0xff] }
  0xed   :  { %617 = vmatprep.subr.mxu1 %v488_v58 }
  0xee   :  { %618 = vmatpush1.msra.mxu1 %v487_v27 }
  0xef   :  { %619 = vmatprep.subr.mxu1 %v484_v28 }
  0xf0   :  { %620 = vmatpush1.msra.mxu1 %v483_v41 }
  0xf1   :  { %1411 = vmatmul.mubr.msk.f32.vlgmr.msra.gmra.mxu1 %vm501_vm9, %v480_v25 }
  0xf2   :  { %1294 = vmatprep.mubr.f32.mxu1 %v1590_v4 }
 0x1a9   :  { %v584_v50 = vpop.f32.mrf.mxu0 }
 0x1aa   :  { %v660_v30 = vsel %vm505_vm4, %v584_v50, 0.0 }
 0x1ab   :  { %v586_v29 = vpop.f32.mrf.mxu0 }
 0x1ac   :  { %v661_v7 = vsel %vm505_vm4, %v586_v29, 0.0 }
 0x1ad   :  { %v662_v14 = vadd.f32 %v661_v7, %v660_v30 }
 0x1b1   :  { %v655_v33 = vpop.f32.mrf.mxu1 }
 0x1b2   :  { %v663_v8 = vsel %vm505_vm4, %v655_v33, 0.0 }
 0x1b3   :  { %v664_v15 = vadd.f32 %v663_v8, %v662_v14  ;;  %v657_v36 = vpop.f32.mrf.mxu1 }
 0x1b4   :  { %v665_v47 = vsel %vm505_vm4, %v657_v36, 0.0 }
 0x1b5   :  { %v666_v37 = vadd.f32 %v665_v47, %v664_v15 }
 0x1b7   :  { %667 = vadd.xlane.f32.xlu0 %v666_v37 }
 0x240   :  { %v668_v38 = vpop.xlane.xlu0 %667 }
 0x241   :  { %v669_v40 = vmul.f32 0.001953125, %v668_v38 }
 0x243   :  { %v670_v42 = vsub.f32 %v584_v50, %v669_v40  ;;  %v671_v4 = vsub.f32 %v586_v29, %v669_v40  ;;  %v672_v44 = vsub.f32 %v655_v33, %v669_v40  ;;  %v673_v45 = vsub.f32 %v657_v36, %v669_v40 }
 0x245   :  { %v674_v46 = vmul.f32 %v670_v42, %v670_v42  ;;  %v675_v48 = vmul.f32 %v671_v4, %v671_v4  ;;  %v676_v49 = vmul.f32 %v672_v44, %v672_v44  ;;  %v677_v34 = vmul.f32 %v673_v45, %v673_v45 }
 0x247   :  { %v678_v54 = vsel %vm505_vm4, %v674_v46, 0.0  ;;  %v679_v60 = vsel %vm505_vm4, %v675_v48, 0.0  ;;  %v681_v31 = vsel %vm505_vm4, %v676_v49, 0.0  ;;  %v683_v57 = vsel %vm505_vm4, %v677_v34, 0.0 }
 0x248   :  { %v680_v55 = vadd.f32 %v679_v60, %v678_v54  ;;  %v1975_v46 = vld [vmem:[#allocation9 + $0x20] ss:$8 sm:$0xf] }
 0x249   :  { %v1102_v54 = vrot.slane %v1975_v46, %v1719_v11 }
 0x24a   :  { %v682_v56 = vadd.f32 %v681_v31, %v680_v55 }
 0x24c   :  { %v684_v59 = vadd.f32 %v683_v57, %v682_v56  ;;  %v1098_v57 = vrot.slane %v1975_v46, %v1717_v10 }
 0x24e   :  { %685 = vadd.xlane.f32.xlu1 %v684_v59 }
 0x2d7   :  { %v686_v16 = vpop.xlane.xlu1 %685 }
 0x2d8   :  { %v687_v61 = vmul.f32 0.0019569471, %v686_v16 }
 0x2da   :  { %1444 = vrsqrt.f32 %v687_v61  ;;  %vm690_vm10 = vcmp.eq.f32.partialorder %v687_v61, inf  ;;  %v693_v5 = vand.u32 2147483648, %v687_v61  ;;  %vm692_vm11 = vcmp.eq.f32.partialorder %v687_v61, 0.0 }
 0x2e7   :  { %v1445_v62 = vpop.eup %1444 }
 0x2e8   :  { %v689_v63 = vmul.f32 %v1445_v62, %v687_v61  ;;  %v1988_v62 = vld [vmem:[#allocation9 + $0x5] ss:$8 sm:$0xf] }
 0x2ea   :  { %v691_v6 = vsel %vm690_vm10, %v687_v61, %v689_v63 }
 0x2eb   :  { %v694_v17 = vsel %vm692_vm11, %v693_v5, %v691_v6 }
 0x2ec   :  { %v695_v43 = vadd.f32 0.001, %v694_v17 }
 0x2ee   :  { %1446 = vrcp.f32 %v695_v43 }
 0x2fb   :  { %v1447_v35 = vpop.eup %1446 }
 0x2fc   :  { %v700_v18 = vmul.f32 %v1447_v35, %v672_v44  ;;  %v699_v19 = vmul.f32 %v1447_v35, %v671_v4  ;;  %v698_v51 = vmul.f32 %v1447_v35, %v670_v42  ;;  %v701_v20 = vmul.f32 %v1447_v35, %v673_v45  ;;  %v1969_v4 = vld [vmem:[#allocation9 + $0x7] ss:$8 sm:$0xf] }
 0x2fd   :  { %v1048_v44 = vrot.slane %v1969_v4, %v1719_v11  ;;  %v1044_v16 = vrot.slane %v1969_v4, %v1717_v10  ;;  %v952_v35 = vrot.slane %v1988_v62, %v1719_v11 }
 0x2fe   :  { %v708_v21 = vmin.f32 %v700_v18, 0.0  ;;  %v707_v22 = vmin.f32 %v699_v19, 0.0  ;;  %v706_v39 = vmin.f32 %v698_v51, 0.0  ;;  %v709_v23 = vmin.f32 %v701_v20, 0.0 }
 0x2ff   :  { %vm704_vm12 = vcmp.gt.f32.partialorder %v700_v18, 0.0  ;;  %vm703_vm13 = vcmp.gt.f32.partialorder %v699_v19, 0.0  ;;  %vm702_vm14 = vcmp.gt.f32.partialorder %v698_v51, 0.0  ;;  %vm705_vm15 = vcmp.gt.f32.partialorder %v701_v20, 0.0 }
 0x300   :  { %v713_v24 = vmul.f32 13.333333, %v708_v21  ;;  %v712_v32 = vmul.f32 13.333333, %v707_v22  ;;  %v711_v12 = vmul.f32 13.333333, %v706_v39 }
 0x301   :  { %v714_v13 = vmul.f32 13.333333, %v709_v23 }
 0x302   :  { %v719_v25 = vmul.f32 1.442695, %v713_v24  ;;  %v717_v26 = vmul.f32 1.442695, %v712_v32  ;;  %v715_v58 = vmul.f32 1.442695, %v711_v12 }
 0x303   :  { %v721_v27 = vmul.f32 1.442695, %v714_v13 }
 0x304   :  { %1448 = vpow2.f32 %v719_v25 }
 0x305   :  { %1450 = vpow2.f32 %v717_v26 }
 0x306   :  { %1452 = vpow2.f32 %v715_v58 }
 0x307   :  { %1454 = vpow2.f32 %v721_v27  ;;  %v948_v27 = vrot.slane %v1988_v62, %v1717_v10 }
 0x311   :  { %v1449_v28 = vpop.eup %1448 }
 0x312   :  { %v1451_v41 = vpop.eup %1450  ;;  %v1414_v50 = vadd.f32 -1.0, %v1449_v28 }
 0x313   :  { %v1453_v29 = vpop.eup %1452  ;;  %v1413_v30 = vadd.f32 -1.0, %v1451_v41  ;;  %v2018_v41 = vld [vmem:[#allocation9 + $0x3] ss:$8 sm:$0xf] }
 0x314   :  { %v1455_v7 = vpop.eup %1454  ;;  %v729_v14 = vmul.f32 0.075, %v1414_v50  ;;  %v1412_v33 = vadd.f32 -1.0, %v1453_v29 }
 0x315   :  { %v728_v8 = vmul.f32 0.075, %v1413_v30  ;;  %v1415_v15 = vadd.f32 -1.0, %v1455_v7 }
 0x316   :  { %v733_v36 = vsel %vm704_vm12, %v700_v18, %v729_v14  ;;  %v727_v47 = vmul.f32 0.075, %v1412_v33  ;;  %v894_v33 = vrot.slane %v2018_v41, %v1719_v11 }
 0x317   :  { %1031 = vrot.lane.b32.xlu1 %v733_v36, %s1583_s9  ;;  %929 = vst [vmem:[#allocation2 + $0x28] sm:$0xf] %v733_v36  ;;  %v732_v37 = vsel %vm703_vm13, %v699_v19, %v728_v8  ;;  %v730_v38 = vmul.f32 0.075, %v1415_v15 }
 0x318   :  { %1029 = vrot.lane.b32.xlu0 %v732_v37, %s1583_s9  ;;  %928 = vst [vmem:[#allocation2 + $0x88] sm:$0xf] %v732_v37  ;;  %v731_v40 = vsel %vm702_vm14, %v698_v51, %v727_v47  ;;  %v1998_v19 = vld [vmem:[#allocation9 + $0x6] ss:$8 sm:$0xf] }
 0x319   :  { %927 = vst [vmem:[#allocation2 + $0x8] sm:$0xf] %v731_v40  ;;  %v734_v42 = vsel %vm705_vm15, %v701_v20, %v730_v38  ;;  %v1006_v39 = vrot.slane %v1998_v19, %v1719_v11  ;;  %v1002_v25 = vrot.slane %v1998_v19, %v1717_v10  ;;  %v1110_v38 = vrot.slane %v1975_v46, %v1784_v53 }
 0x31a   :  { %930 = vst [vmem:[#allocation2 + $0x40] sm:$0xf] %v734_v42 }
 0x31b   :  { %1085 = vrot.lane.b32.xlu1 %v733_v36, %s1582_s2 }
 0x31c   :  { %1083 = vrot.lane.b32.xlu0 %v732_v37, %s1582_s2 }
 0x31f   :  { %1081 = vrot.lane.b32.xlu1 %v731_v40, %s1582_s2 }
 0x320   :  { %1027 = vrot.lane.b32.xlu0 %v731_v40, %s1583_s9 }
 0x323   :  { %935 = vrot.lane.b32.xlu1 %v733_v36, %s1584_s3 }
 0x324   :  { %933 = vrot.lane.b32.xlu0 %v732_v37, %s1584_s3 }
 0x327   :  { %989 = vrot.lane.b32.xlu1 %v733_v36, %s1585_s10 }
 0x328   :  { %987 = vrot.lane.b32.xlu0 %v732_v37, %s1585_s10 }
 0x32b   :  { %985 = vrot.lane.b32.xlu1 %v731_v40, %s1585_s10 }
 0x32c   :  { %931 = vrot.lane.b32.xlu0 %v731_v40, %s1584_s3 }
 0x32f   :  { %875 = vrot.lane.b32.xlu1 %v732_v37, %s1586_s11 }
 0x330   :  { %873 = vrot.lane.b32.xlu0 %v731_v40, %s1586_s11 }
 0x333   :  { %1087 = vrot.lane.b32.xlu1 %v734_v42, %s1582_s2 }
 0x334   :  { %1033 = vrot.lane.b32.xlu0 %v734_v42, %s1583_s9 }
 0x337   :  { %777 = vrot.lane.b32.xlu1 %v731_v40, %s1587_s12 }
 0x338   :  { %879 = vrot.lane.b32.xlu0 %v734_v42, %s1586_s11 }
 0x33b   :  { %831 = vrot.lane.b32.xlu1 %v731_v40, %s1588_s13 }
 0x33c   :  { %779 = vrot.lane.b32.xlu0 %v732_v37, %s1587_s12 }
 0x33f   :  { %937 = vrot.lane.b32.xlu1 %v734_v42, %s1584_s3 }
 0x340   :  { %833 = vrot.lane.b32.xlu0 %v732_v37, %s1588_s13 }
 0x343   :  { %783 = vrot.lane.b32.xlu1 %v734_v42, %s1587_s12 }
 0x344   :  { %991 = vrot.lane.b32.xlu0 %v734_v42, %s1585_s10 }
 0x347   :  { %735 = vrot.lane.b32.xlu1 %v731_v40, %s1589_s14 }
 0x348   :  { %837 = vrot.lane.b32.xlu0 %v734_v42, %s1588_s13 }
 0x34b   :  { %877 = vrot.lane.b32.xlu1 %v733_v36, %s1586_s11 }
 0x34c   :  { %737 = vrot.lane.b32.xlu0 %v732_v37, %s1589_s14  ;;  %v1106_v37 = vrot.slane %v1975_v46, %v1782_v52 }
 0x34f   :  { %781 = vrot.lane.b32.xlu1 %v733_v36, %s1587_s12 }
 0x350   :  { %741 = vrot.lane.b32.xlu0 %v734_v42, %s1589_s14  ;;  %v1052_v42 = vrot.slane %v1969_v4, %v1782_v52 }
 0x353   :  { %739 = vrot.lane.b32.xlu1 %v733_v36, %s1589_s14 }
 0x354   :  { %835 = vrot.lane.b32.xlu0 %v733_v36, %s1588_s13 }
 0x389   :  { %v1973_v45 = vpop.permute.xlu1 %1031 }
 0x38a   :  { %v1030_v48 = vpop.permute.xlu0 %1029 }
 0x38b   :  { %v1036_v49 = vsel %vm388_vm1, %v1030_v48, %v1973_v45 }
 0x38c   :  { %v1062_v34 = vmul.f32 %v1048_v44, %v1036_v49  ;;  %v1056_v44 = vrot.slane %v1969_v4, %v1784_v53 }
 0x38d   :  { %v1086_v60 = vpop.permute.xlu1 %1085 }
 0x38e   :  { %v1070_v55 = vrot.slane %v1062_v34, 4  ;;  %v1084_v31 = vpop.permute.xlu0 %1083 }
 0x38f   :  { %v1090_v56 = vsel %vm444_vm0, %v1084_v31, %v1086_v60 }
 0x390   :  { %1078 = vst [vmem:[#allocation2 + $0x10] sm:$0xf0] %v1070_v55  ;;  %v1116_v59 = vmul.f32 %v1102_v54, %v1090_v56 }
 0x391   :  { %v1082_v61 = vpop.permute.xlu1 %1081 }
 0x392   :  { %1120 = vst [vmem:[#allocation2 + $0x48] sm:$0xf] %v1116_v59  ;;  %v1091_v63 = vsel %vm444_vm0, %v1082_v61, %v1084_v31  ;;  %v1028_v5 = vpop.permute.xlu0 %1027 }
 0x393   :  { %v1115_v6 = vmul.f32 %v1098_v57, %v1091_v63  ;;  %v1037_v17 = vsel %vm388_vm1, %v1028_v5, %v1030_v48 }
 0x394   :  { %v1061_v43 = vmul.f32 %v1044_v16, %v1037_v17  ;;  %v2054_v17 = vld [vmem:[#allocation9 + $0x1] ss:$8 sm:$0xf] }
 0x395   :  { %1119 = vst [vmem:[#allocation2 + $0x20] sm:$0xf] %v1115_v6  ;;  %v1996_v18 = vpop.permute.xlu1 %935 }
 0x396   :  { %v1069_v51 = vrot.slane %v1061_v43, 4  ;;  %v934_v20 = vpop.permute.xlu0 %933 }
 0x397   :  { %v940_v21 = vsel %vm288_vm2, %v934_v20, %v1996_v18 }
 0x398   :  { %1077 = vst [vmem:[#allocation2 + $0x58] sm:$0xf0] %v1069_v51  ;;  %v966_v22 = vmul.f32 %v952_v35, %v940_v21  ;;  %v798_v21 = vrot.slane %v2054_v17, %v1719_v11 }
 0x399   :  { %v1141_v23 = vld [vmem:[#allocation2 + $0x48] sm:$0xf]  ;;  %v2005_v24 = vpop.permute.xlu1 %989 }
 0x39a   :  { %v974_v32 = vrot.slane %v966_v22, 4  ;;  %1416 = vmatprep.subr.msk.mxu0 %vm505_vm4, %v1141_v23  ;;  %v988_v12 = vpop.permute.xlu0 %987 }
 0x39b   :  { %v994_v13 = vsel %vm344_vm3, %v988_v12, %v2005_v24 }
 0x39c   :  { %982 = vst [vmem:[#allocation2 + $0x88] sm:$0xf0] %v974_v32  ;;  %v1020_v26 = vmul.f32 %v1006_v39, %v994_v13  ;;  %v1140_v58 = vld [vmem:[#allocation2 + $0x20] sm:$0xf]  ;;  %v956_v13 = vrot.slane %v1988_v62, %v1782_v52 }
 0x39d   :  { %1417 = vmatpush1.msk.msra.mxu0 %vm505_vm4, %v1140_v58  ;;  %v2016_v28 = vpop.permute.xlu1 %985  ;;  %v2063_v39 = vld [vmem:[#allocation9 + $0x2] ss:$8 sm:$0xf] }
 0x39e   :  { %1024 = vst [vmem:[#allocation2 + $0x10] sm:$0xf] %v1020_v26  ;;  %v995_v50 = vsel %vm344_vm3, %v2016_v28, %v988_v12  ;;  %v2023_v29 = vpop.permute.xlu0 %931 }
 0x39f   :  { %v1019_v30 = vmul.f32 %v1002_v25, %v995_v50  ;;  %v941_v7 = vsel %vm288_vm2, %v2023_v29, %v934_v20  ;;  %v960_v25 = vrot.slane %v1988_v62, %v1784_v53 }
 0x3a0   :  { %v965_v14 = vmul.f32 %v948_v27, %v941_v7  ;;  %v852_v27 = vrot.slane %v2063_v39, %v1719_v11 }
 0x3a1   :  { %1023 = vst [vmem:[#allocation2 + $0x58] sm:$0xf] %v1019_v30  ;;  %v2030_v8 = vpop.permute.xlu1 %875 }
 0x3a2   :  { %v973_v15 = vrot.slane %v965_v14, 4  ;;  %v874_v36 = vpop.permute.xlu0 %873 }
 0x3a3   :  { %v883_v47 = vsel %vm228_vm5, %v874_v36, %v2030_v8  ;;  %v1133_v6 = vld [vmem:[#allocation2 + $0x88] sm:$0xff] }
 0x3a4   :  { %981 = vst [vmem:[#allocation2 + $0x8] sm:$0xf0] %v973_v15  ;;  %v908_v40 = vmul.f32 %v894_v33, %v883_v47 }
 0x3a5   :  { %v1088_v48 = vpop.permute.xlu1 %1087  ;;  %v1137_v49 = vld [vmem:[#allocation2 + $0x10] sm:$0xff] }
 0x3a6   :  { %v916_v34 = vrot.slane %v908_v40, 4  ;;  %v1089_v54 = vsel %vm444_vm0, %v1086_v60, %v1088_v48  ;;  %v1092_v55 = vsel %vm444_vm0, %v1088_v48, %v1082_v61  ;;  %1183 = vmatprep.subr.mxu0 %v1137_v49  ;;  %v1034_v31 = vpop.permute.xlu0 %1033  ;;  %v890_v60 = vrot.slane %v2018_v41, %v1717_v10 }
 0x3a7   :  { %v1117_v46 = vmul.f32 %v1106_v37, %v1089_v54  ;;  %v1118_v56 = vmul.f32 %v1110_v38, %v1092_v55  ;;  %v1035_v57 = vsel %vm388_vm1, %v1973_v45, %v1034_v31  ;;  %v1038_v4 = vsel %vm388_vm1, %v1034_v31, %v1028_v5 }
 0x3a8   :  { %924 = vst [vmem:[#allocation2 + $0x68] sm:$0xf0] %v916_v34  ;;  %v1063_v59 = vmul.f32 %v1052_v42, %v1035_v57  ;;  %v1064_v16 = vmul.f32 %v1056_v44, %v1038_v4  ;;  %v1136_v63 = vld [vmem:[#allocation2 + $0x58] sm:$0xff]  ;;  %v794_v37 = vrot.slane %v2054_v17, %v1717_v10 }
 0x3a9   :  { %1121 = vst [vmem:[#allocation2 + $0x70] sm:$0xf] %v1117_v46  ;;  %1122 = vst [vmem:[#allocation2 + $0x90] sm:$0xf] %v1118_v56  ;;  %v778_v61 = vpop.permute.xlu1 %777  ;;  %1184 = vmatpush1.msra.mxu0 %v1136_v63  ;;  %v848_v46 = vrot.slane %v2063_v39, %v1717_v10 }
 0x3aa   :  { %v1071_v43 = vrot.slane %v1063_v59, 4  ;;  %v1072_v35 = vrot.slane %v1064_v16, 4  ;;  %v2056_v45 = vpop.permute.xlu0 %879  ;;  %1185 = vmatprep.subr.mxu0 %v1133_v6  ;;  %v747_v4 = vld [vmem:[#allocation9] ss:$8 sm:$0xf] }
 0x3ab   :  { %v884_v5 = vsel %vm228_vm5, %v2056_v45, %v874_v36  ;;  %v1132_v51 = vld [vmem:[#allocation2 + $0x8] sm:$0xff] }
 0x3ac   :  { %1079 = vst [vmem:[#allocation2 + $0x98] sm:$0xf0] %v1071_v43  ;;  %1080 = vst [vmem:[#allocation2 + $0x60] sm:$0xf0] %v1072_v35  ;;  %v907_v20 = vmul.f32 %v890_v60, %v884_v5  ;;  %1186 = vmatpush1.msra.mxu0 %v1132_v51  ;;  %v756_v60 = vrot.slane %v747_v4, %v1719_v11  ;;  %v802_v51 = vrot.slane %v2054_v17, %v1782_v52 }
 0x3ad   :  { %v832_v22 = vpop.permute.xlu1 %831 }
 0x3ae   :  { %v915_v23 = vrot.slane %v907_v20, 4  ;;  %v2065_v32 = vpop.permute.xlu0 %779 }
 0x3af   :  { %v787_v12 = vsel %vm128_vm6, %v778_v61, %v2065_v32 }
 0x3b0   :  { %923 = vst [vmem:[#allocation2 + $0x30] sm:$0xf0] %v915_v23  ;;  %v812_v26 = vmul.f32 %v798_v21, %v787_v12  ;;  %v1143_v58 = vld [vmem:[#allocation2 + $0x90] sm:$0xf]  ;;  %v806_v21 = vrot.slane %v2054_v17, %v1784_v53  ;;  %v760_v17 = vrot.slane %v747_v4, %v1782_v52 }
 0x3b1   :  { %v1142_v50 = vld [vmem:[#allocation2 + $0x70] sm:$0xf]  ;;  %1419 = vmatprep.subr.msk.mxu1 %vm505_vm4, %v1143_v58  ;;  %v938_v30 = vpop.permute.xlu1 %937 }
 0x3b2   :  { %v820_v7 = vrot.slane %v812_v26, 4  ;;  %v939_v14 = vsel %vm288_vm2, %v1996_v18, %v938_v30  ;;  %v942_v33 = vsel %vm288_vm2, %v938_v30, %v2023_v29  ;;  %v2083_v62 = vpop.permute.xlu0 %833  ;;  %1420 = vmatpush1.msk.msra.mxu1 %vm505_vm4, %v1142_v50  ;;  %v1010_v18 = vrot.slane %v1998_v19, %v1782_v52 }
 0x3b3   :  { %v967_v15 = vmul.f32 %v956_v13, %v939_v14  ;;  %v968_v36 = vmul.f32 %v960_v25, %v942_v33  ;;  %v841_v47 = vsel %vm184_vm7, %v832_v22, %v2083_v62  ;;  %v1014_v29 = vrot.slane %v1998_v19, %v1784_v53 }
 0x3b4   :  { %828 = vst [vmem:[#allocation2 + $0x38] sm:$0xf0] %v820_v7  ;;  %v866_v38 = vmul.f32 %v852_v27, %v841_v47  ;;  %v764_v14 = vrot.slane %v747_v4, %v1784_v53 }
 0x3b5   :  { %v975_v40 = vrot.slane %v967_v15, 4  ;;  %v976_v42 = vrot.slane %v968_v36, 4  ;;  %v784_v44 = vpop.permute.xlu1 %783  ;;  %v860_v36 = vrot.slane %v2063_v39, %v1784_v53 }
 0x3b6   :  { %870 = vst [vmem:[#allocation2 + $0x68] sm:$0xf] %v866_v38  ;;  %v788_v48 = vsel %vm128_vm6, %v784_v44, %v778_v61  ;;  %v992_v49 = vpop.permute.xlu0 %991 }
 0x3b7   :  { %983 = vst [vmem:[#allocation2 + $0x28] sm:$0xf0] %v975_v40  ;;  %984 = vst [vmem:[#allocation2 + $0x40] sm:$0xf0] %v976_v42  ;;  %v811_v34 = vmul.f32 %v794_v37, %v788_v48  ;;  %v993_v54 = vsel %vm344_vm3, %v2005_v24, %v992_v49  ;;  %v996_v55 = vsel %vm344_vm3, %v992_v49, %v2016_v28 }
 0x3b8   :  { %v1021_v19 = vmul.f32 %v1010_v18, %v993_v54  ;;  %v1022_v31 = vmul.f32 %v1014_v29, %v996_v55  ;;  %v898_v24 = vrot.slane %v2018_v41, %v1782_v52  ;;  %v902_v28 = vrot.slane %v2018_v41, %v1784_v53  ;;  %v1123_v54 = vld [vmem:[#allocation8] sm:$0xf] }
 0x3b9   :  { %v819_v56 = vrot.slane %v811_v34, 4  ;;  %v736_v57 = vpop.permute.xlu1 %735 }
 0x3ba   :  { %1025 = vst [vmem:[#allocation2 + $0x98] sm:$0xf] %v1021_v19  ;;  %1026 = vst [vmem:[#allocation2 + $0x60] sm:$0xf] %v1022_v31  ;;  %v838_v59 = vpop.permute.xlu0 %837 }
 0x3bb   :  { %827 = vst [vmem:[#allocation2] sm:$0xf0] %v819_v56  ;;  %v842_v16 = vsel %vm184_vm7, %v838_v59, %v832_v22 }
 0x3bc   :  { %v865_v63 = vmul.f32 %v848_v46, %v842_v16 }
 0x3bd   :  { %v878_v61 = vpop.permute.xlu1 %877  ;;  %v1129_v6 = vld [vmem:[#allocation2 + $0x68] sm:$0xff] }
 0x3be   :  { %869 = vst [vmem:[#allocation2 + $0x30] sm:$0xf] %v865_v63  ;;  %v881_v43 = vsel %vm228_vm5, %v878_v61, %v2056_v45  ;;  %v882_v35 = vsel %vm228_vm5, %v2030_v8, %v878_v61  ;;  %v738_v5 = vpop.permute.xlu0 %737  ;;  %1187 = vmatprep.subr.mxu0 %v1129_v6  ;;  %v752_v45 = vrot.slane %v747_v4, %v1717_v10  ;;  %v1135_v7 = vld [vmem:[#allocation2 + $0x40] sm:$0xff]  ;;  %v1134_v15 = vld [vmem:[#allocation2 + $0x28] sm:$0xff] }
 0x3bf   :  { %v909_v41 = vmul.f32 %v898_v24, %v882_v35  ;;  %v910_v20 = vmul.f32 %v902_v28, %v881_v43  ;;  %v745_v11 = vsel %vm85_vm8, %v736_v57, %v738_v5 }
 0x3c0   :  { %v770_v22 = vmul.f32 %v756_v60, %v745_v11 }
 0x3c1   :  { %v917_v23 = vrot.slane %v909_v41, 4  ;;  %v918_v12 = vrot.slane %v910_v20, 4  ;;  %v782_v13 = vpop.permute.xlu1 %781  ;;  %v1139_v8 = vld [vmem:[#allocation2 + $0x60] sm:$0xff]  ;;  %v1138_v25 = vld [vmem:[#allocation2 + $0x98] sm:$0xff] }
 0x3c2   :  { %774 = vst [vmem:[#allocation2 + $0x38] sm:$0xf] %v770_v22  ;;  %v785_v26 = vsel %vm128_vm6, %v782_v13, %v784_v44  ;;  %v786_v58 = vsel %vm128_vm6, %v2065_v32, %v782_v13  ;;  %1254 = vmatprep.subr.mxu1 %v1139_v8  ;;  %v742_v27 = vpop.permute.xlu0 %741  ;;  %v856_v32 = vrot.slane %v2063_v39, %v1782_v52 }
 0x3c3   :  { %925 = vst [vmem:[#allocation2 + $0x78] sm:$0xf0] %v917_v23  ;;  %926 = vst [vmem:[#allocation2 + $0x80] sm:$0xf0] %v918_v12  ;;  %v813_v10 = vmul.f32 %v802_v51, %v786_v58  ;;  %v814_v50 = vmul.f32 %v806_v21, %v785_v26  ;;  %v746_v30 = vsel %vm85_vm8, %v742_v27, %v736_v57  ;;  %1255 = vmatpush1.msra.mxu1 %v1138_v25 }
 0x3c4   :  { %v769_v33 = vmul.f32 %v752_v45, %v746_v30  ;;  %1256 = vmatprep.subr.mxu1 %v1135_v7 }
 0x3c5   :  { %v821_v47 = vrot.slane %v813_v10, 4  ;;  %v822_v37 = vrot.slane %v814_v50, 4  ;;  %1257 = vmatpush1.msra.mxu1 %v1134_v15  ;;  %v740_v38 = vpop.permute.xlu1 %739  ;;  %v1128_v18 = vld [vmem:[#allocation2 + $0x30] sm:$0xff] }
 0x3c6   :  { %773 = vst [vmem:[#allocation2] sm:$0xf] %v769_v33  ;;  %v743_v29 = vsel %vm85_vm8, %v740_v38, %v742_v27  ;;  %v744_v40 = vsel %vm85_vm8, %v738_v5, %v740_v38  ;;  %v836_v42 = vpop.permute.xlu0 %835  ;;  %1188 = vmatpush1.msra.mxu0 %v1128_v18 }
 0x3c7   :  { %829 = vst [vmem:[#allocation2 + $0x50] sm:$0xf0] %v821_v47  ;;  %830 = vst [vmem:[#allocation2 + $0x18] sm:$0xf0] %v822_v37  ;;  %v771_v52 = vmul.f32 %v760_v17, %v744_v40  ;;  %v772_v44 = vmul.f32 %v764_v14, %v743_v29  ;;  %v839_v53 = vsel %vm184_vm7, %v836_v42, %v838_v59 }
 0x3c8   :  { %v840_v39 = vsel %vm184_vm7, %v2083_v62, %v836_v42  ;;  %v868_v49 = vmul.f32 %v860_v36, %v839_v53 }
 0x3c9   :  { %v867_v48 = vmul.f32 %v856_v32, %v840_v39  ;;  %775 = vst [vmem:[#allocation2 + $0x50] sm:$0xf] %v771_v52  ;;  %776 = vst [vmem:[#allocation2 + $0x18] sm:$0xf] %v772_v44  ;;  %v1125_v34 = vld [vmem:[#allocation2 + $0x38] sm:$0xff] }
 0x3ca   :  { %872 = vst [vmem:[#allocation2 + $0x80] sm:$0xf] %v868_v49  ;;  %1189 = vmatprep.subr.mxu0 %v1125_v34 }
 0x3cb   :  { %871 = vst [vmem:[#allocation2 + $0x78] sm:$0xf] %v867_v48 }
 0x3cd   :  { %v1124_v55 = vld [vmem:[#allocation2] sm:$0xff] }
 0x3ce   :  { %1190 = vmatpush1.msra.mxu0 %v1124_v55 }
 0x3cf   :  { %1418 = vmatmul.mubr.msk.f32.vlgmr.msra.gmra.mxu0 %vm501_vm9, %v1123_v54 }
 0x3d0   :  { %v1127_v46 = vld [vmem:[#allocation2 + $0x18] sm:$0xff]  ;;  %v1126_v9 = vld [vmem:[#allocation2 + $0x50] sm:$0xff] }
 0x3d1   :  { %v1131_v19 = vld [vmem:[#allocation2 + $0x80] sm:$0xff] }
 0x3d2   :  { %v1130_v31 = vld [vmem:[#allocation2 + $0x78] sm:$0xff]  ;;  %1258 = vmatprep.subr.mxu1 %v1131_v19 }
 0x3d3   :  { %1259 = vmatpush1.msra.mxu1 %v1130_v31 }
 0x3d4   :  { %1260 = vmatprep.subr.mxu1 %v1127_v46 }
 0x3d5   :  { %1261 = vmatpush1.msra.mxu1 %v1126_v9 }
 0x3d6   :  { %1421 = vmatmul.mubr.msk.f32.vlgmr.msra.gmra.mxu1 %vm501_vm9, %v1123_v54 }
 0x48f   :  { %v1225_v62 = vpop.f32.mrf.mxu0 }
 0x490   :  { %v1301_v57 = vsel %vm505_vm4, %v1225_v62, 0.0 }
 0x491   :  { %v1227_v56 = vpop.f32.mrf.mxu0 }
 0x492   :  { %v1302_v4 = vsel %vm505_vm4, %v1227_v56, 0.0 }
 0x493   :  { %v1303_v59 = vadd.f32 %v1302_v4, %v1301_v57 }
 0x496   :  { %v1296_v16 = vpop.f32.mrf.mxu1 }
 0x497   :  { %v1304_v24 = vsel %vm505_vm4, %v1296_v16, 0.0 }
 0x498   :  { %v1305_v28 = vadd.f32 %v1304_v24, %v1303_v59  ;;  %v1298_v63 = vpop.f32.mrf.mxu1 }
 0x499   :  { %v1306_v60 = vsel %vm505_vm4, %v1298_v63, 0.0 }
 0x49a   :  { %v1307_v61 = vadd.f32 %v1306_v60, %v1305_v28 }
 0x49c   :  { %1308 = vadd.xlane.f32.xlu0 %v1307_v61 }
 0x525   :  { %v1309_v6 = vpop.xlane.xlu0 %1308 }
 0x526   :  { %v1310_v43 = vmul.f32 0.001953125, %v1309_v6 }
 0x528   :  { %v1311_v35 = vsub.f32 %v1225_v62, %v1310_v43  ;;  %v1312_v5 = vsub.f32 %v1227_v56, %v1310_v43  ;;  %v1313_v51 = vsub.f32 %v1296_v16, %v1310_v43  ;;  %v1314_v41 = vsub.f32 %v1298_v63, %v1310_v43 }
 0x52a   :  { %v1315_v20 = vmul.f32 %v1311_v35, %v1311_v35  ;;  %v1316_v11 = vmul.f32 %v1312_v5, %v1312_v5  ;;  %v1317_v21 = vmul.f32 %v1313_v51, %v1313_v51  ;;  %v1318_v22 = vmul.f32 %v1314_v41, %v1314_v41 }
 0x52c   :  { %v1319_v45 = vsel %vm505_vm4, %v1315_v20, 0.0  ;;  %v1320_v23 = vsel %vm505_vm4, %v1316_v11, 0.0  ;;  %v1322_v13 = vsel %vm505_vm4, %v1317_v21, 0.0  ;;  %v1324_v25 = vsel %vm505_vm4, %v1318_v22, 0.0 }
 0x52d   :  { %v1321_v12 = vadd.f32 %v1320_v23, %v1319_v45 }
 0x52f   :  { %v1323_v8 = vadd.f32 %v1322_v13, %v1321_v12 }
 0x531   :  { %v1325_v26 = vadd.f32 %v1324_v25, %v1323_v8 }
 0x533   :  { %1326 = vadd.xlane.f32.xlu1 %v1325_v26 }
 0x5bc   :  { %v1327_v58 = vpop.xlane.xlu1 %1326 }
 0x5bd   :  { %v1328_v27 = vmul.f32 0.0019569471, %v1327_v58 }
 0x5bf   :  { %1456 = vrsqrt.f32 %v1328_v27  ;;  %vm1331_vm0 = vcmp.eq.f32.partialorder %v1328_v27, inf  ;;  %v1334_v50 = vand.u32 2147483648, %v1328_v27  ;;  %vm1333_vm1 = vcmp.eq.f32.partialorder %v1328_v27, 0.0 }
 0x5cc   :  { %v1457_v17 = vpop.eup %1456 }
 0x5cd   :  { %v1330_v10 = vmul.f32 %v1457_v17, %v1328_v27 }
 0x5cf   :  { %v1332_v30 = vsel %vm1331_vm0, %v1328_v27, %v1330_v10 }
 0x5d0   :  { %v1335_v7 = vsel %vm1333_vm1, %v1334_v50, %v1332_v30 }
 0x5d1   :  { %v1336_v14 = vadd.f32 0.001, %v1335_v7 }
 0x5d3   :  { %1458 = vrcp.f32 %v1336_v14 }
 0x5e0   :  { %v1459_v33 = vpop.eup %1458 }
 0x5e1   :  { %v1339_v15 = vmul.f32 %v1459_v33, %v1311_v35  ;;  %v1340_v32 = vmul.f32 %v1459_v33, %v1312_v5  ;;  %v1341_v36 = vmul.f32 %v1459_v33, %v1313_v51  ;;  %v1342_v47 = vmul.f32 %v1459_v33, %v1314_v41 }
 0x5e3   :  { %v1343_v37 = vadd.f32 %v1339_v15, %v1631_v1  ;;  %v1344_v38 = vadd.f32 %v1340_v32, %v1641_v2  ;;  %v1345_v18 = vadd.f32 %v1341_v36, %v1629_v0  ;;  %v1346_v29 = vadd.f32 %v1342_v47, %v1645_v3 }
 0x5e5   :  { %v1351_v40 = vmin.f32 %v1343_v37, 0.0  ;;  %v1352_v42 = vmin.f32 %v1344_v38, 0.0  ;;  %v1353_v52 = vmin.f32 %v1345_v18, 0.0  ;;  %v1354_v44 = vmin.f32 %v1346_v29, 0.0 }
 0x5e6   :  { %vm1347_vm2 = vcmp.gt.f32.partialorder %v1343_v37, 0.0  ;;  %vm1348_vm3 = vcmp.gt.f32.partialorder %v1344_v38, 0.0  ;;  %vm1349_vm4 = vcmp.gt.f32.partialorder %v1345_v18, 0.0  ;;  %vm1350_vm5 = vcmp.gt.f32.partialorder %v1346_v29, 0.0 }
 0x5e7   :  { %v1355_v53 = vmul.f32 13.333333, %v1351_v40  ;;  %v1356_v39 = vmul.f32 13.333333, %v1352_v42  ;;  %v1357_v48 = vmul.f32 13.333333, %v1353_v52 }
 0x5e8   :  { %v1358_v49 = vmul.f32 13.333333, %v1354_v44 }
 0x5e9   :  { %v1359_v34 = vmul.f32 1.442695, %v1355_v53  ;;  %v1361_v54 = vmul.f32 1.442695, %v1356_v39  ;;  %v1363_v55 = vmul.f32 1.442695, %v1357_v48 }
 0x5ea   :  { %v1365_v19 = vmul.f32 1.442695, %v1358_v49 }
 0x5eb   :  { %1460 = vpow2.f32 %v1359_v34 }
 0x5ec   :  { %1462 = vpow2.f32 %v1361_v54 }
 0x5ed   :  { %1464 = vpow2.f32 %v1363_v55 }
 0x5ee   :  { %1466 = vpow2.f32 %v1365_v19 }
 0x5f8   :  { %v1461_v1 = vpop.eup %1460 }
 0x5f9   :  { %v1463_v0 = vpop.eup %1462  ;;  %v1422_v2 = vadd.f32 -1.0, %v1461_v1 }
 0x5fa   :  { %v1465_v3 = vpop.eup %1464  ;;  %v1423_v31 = vadd.f32 -1.0, %v1463_v0 }
 0x5fb   :  { %v1467_v46 = vpop.eup %1466  ;;  %v1424_v9 = vadd.f32 -1.0, %v1465_v3  ;;  %v1371_v62 = vmul.f32 0.075, %v1422_v2 }
 0x5fc   :  { %v1425_v56 = vadd.f32 -1.0, %v1467_v46  ;;  %v1372_v57 = vmul.f32 0.075, %v1423_v31 }
 0x5fd   :  { %v1373_v4 = vmul.f32 0.075, %v1424_v9  ;;  %v1375_v59 = vsel %vm1347_vm2, %v1343_v37, %v1371_v62 }
 0x5fe   :  { %v1374_v16 = vmul.f32 0.075, %v1425_v56  ;;  %v1376_v24 = vsel %vm1348_vm3, %v1344_v38, %v1372_v57 }
 0x5ff   :  { %v1377_v28 = vsel %vm1349_vm4, %v1345_v18, %v1373_v4  ;;  %v1383_v63 = vcombine.low %v1375_v59, %v1376_v24 }
 0x600   :  { %v1378_v60 = vsel %vm1350_vm5, %v1346_v29, %v1374_v16 }
 0x601   :  { %v1384_v61 = vcombine.low %v1377_v28, %v1378_v60  ;;  %1387 = vst [vmem:[#allocation11] sm:$0xff] %v1383_v63 }
 0x603   :  { %1388 = vst [vmem:[#allocation11 + $0x8] sm:$0xff] %v1384_v61 }
 0x604   :  { %1559 = shalt.err (!%p1556_p10)
}
 0x605   :  { %1398 = dma.vmem_to_hbm [thread:$0]  %s1396_s16, 256, %s2168_s4, [#allocation5]  }
 0x606   :  { %1574 = dma.done.wait [#allocation5], 256  }
 0x607   :  { %1575 = vsyncadd [#allocation5], 4294967040 }
 0x608   :  { %1402 = vsyncpa [#allocation4], 1 }
 0x609   :  { %1403 = vsyncpa [#allocation7], 1 }
 0x60a   :  { %1404 = vsyncpa [#allocation10], 1 }
 0x60b   :  { %1405 = vsyncpa [#allocation5], 1 }

</bundles_post_ra>
